<compile_context>
chip_gen: v6e
topology: v6e:2x2x1
jax: 0.10.0
libtpu: 0.0.40
codegen_flags: <defaults>
</compile_context>

<pallas_src>
import math

import jax
import jax.numpy as jnp
from jax import lax
from jax.experimental import pallas as pl
from jax.experimental.pallas import tpu as pltpu


def _round_up(x, m):
    return ((x + m - 1) // m) * m


# ----------------------------------------------------------------------------
# Pallas kernel: fused forward+backward LSTM recurrence over one time chunk.
# Grid = (direction, time_chunk); direction is "parallel", time is "arbitrary".
# ----------------------------------------------------------------------------
def _make_bilstm_kernel(tT, H, compute_dtype):
    def kernel(gx_ref, m_ref, whh_ref, y_ref, hn_ref, cn_ref):
        """
        gx_ref:  (tT, B, 4H) f32  pre-projected gates  x @ W_ih + b  (per direction)
        m_ref:   (tT, B, 1)  f32  validity mask (1.0 if t < length else 0.0)
        whh_ref: (H, 4H)     f32  recurrent weights (per direction)
        y_ref:   (tT, B, H)  f32  per-step hidden output (0 at padded steps)
        hn_ref:  (B, H)      f32  final hidden state  (carried across time chunks)
        cn_ref:  (B, H)      f32  final cell state    (carried across time chunks)
        """
        j = pl.program_id(1)                 # time-chunk index
        is_bwd = pl.program_id(0) == 1       # 0 = forward, 1 = backward

        # h/c live in the resident hn/cn output blocks across the time axis.
        @pl.when(j == 0)
        def _init():
            hn_ref[...] = jnp.zeros_like(hn_ref)
            cn_ref[...] = jnp.zeros_like(cn_ref)

        w_hh = whh_ref[...].astype(compute_dtype)          # hoisted cast

        def step(s, carry):
            h, c = carry
            # local timestep inside the chunk (reversed for the backward pass;
            # chunks themselves arrive in reversed order via the index_map).
            ls = jnp.where(is_bwd, tT - 1 - s, s)
            gates = gx_ref[ls] + jnp.dot(h.astype(compute_dtype), w_hh,
                                         preferred_element_type=jnp.float32)
            # PyTorch gate order: i, f, g, o.  For H >= 128 these static slices
            # are 128-lane aligned; for tiny H they fall inside one vreg.
            i_g = jax.nn.sigmoid(gates[:, 0 * H:1 * H])
            f_g = jax.nn.sigmoid(gates[:, 1 * H:2 * H])
            g_g = jnp.tanh(gates[:, 2 * H:3 * H])
            o_g = jax.nn.sigmoid(gates[:, 3 * H:4 * H])
            c_new = f_g * c + i_g * g_g
            h_new = o_g * jnp.tanh(c_new)

            m = m_ref[ls]                                   # (B, 1)
            h_nxt = m * h_new + (1.0 - m) * h               # freeze state on pad
            c_nxt = m * c_new + (1.0 - m) * c
            y_ref[ls] = m * h_new                           # padded steps -> 0.0
            return h_nxt, c_nxt

        h_fin, c_fin = lax.fori_loop(0, tT, step, (hn_ref[...], cn_ref[...]),
                                     unroll=True)
        hn_ref[...] = h_fin
        cn_ref[...] = c_fin

    return kernel


# ----------------------------------------------------------------------------
# Wrapper: one bidirectional LSTM layer (both directions in a single pallas_call).
# ----------------------------------------------------------------------------
def _bilstm_layer(x_tbd, mask_tb1, w_ih, w_hh, bias, *, tT, matmul_dtype):
    """
    x_tbd:    (T_pad, B, D) f32 time-major input
    mask_tb1: (T_pad, B, 1) f32 validity mask
    w_ih:     (2, D, 4H)    f32 per-direction transposed input weights
    w_hh:     (2, H, 4H)    f32 per-direction transposed recurrent weights
    bias:     (2, 1, 4H)    f32 per-direction (b_ih + b_hh)
    returns   y_cat (T_pad, B, 2H), h_n (2, B, H), c_n (2, B, H)
    """
    T_pad, B, D = x_tbd.shape
    H = w_hh.shape[1]
    G = 4 * H
    nT = T_pad // tT
    cd = matmul_dtype

    # (1) Hoisted input projection: one large MXU-friendly GEMM for the whole
    # sequence and both directions, bias folded in.  (f32 accumulation.)
    gx = jnp.einsum("tbd,kdg->ktbg", x_tbd.astype(cd), w_ih.astype(cd),
                    preferred_element_type=jnp.float32)
    gx = gx + bias[:, :, None, :]                           # (2, T_pad, B, 4H)

    def t_block(d, j):
        # forward walks chunks 0..nT-1; backward walks them in reverse.
        return j + d * (nT - 1 - 2 * j)

    kernel = _make_bilstm_kernel(tT, H, cd)

    # VMEM budget: double-buffered streamed blocks + resident weights/state
    # (sublane/lane padding included); stay well under v7x's 64 MiB.
    pad_b = max(B, 8)
    blk_bytes = 4 * tT * pad_b * (G + 128 + max(H, 128)) * 2      # gx + mask + y
    res_bytes = 4 * (max(H, 8) * G + 4 * pad_b * max(H, 128)) * 2  # w_hh + hn/cn
    vmem_limit = int(min(max(2 * (blk_bytes + res_bytes), 32 << 20), 48 << 20))

    y, h_n, c_n = pl.pallas_call(
        kernel,
        out_shape=(
            jax.ShapeDtypeStruct((2, T_pad, B, H), jnp.float32),
            jax.ShapeDtypeStruct((2, B, H), jnp.float32),
            jax.ShapeDtypeStruct((2, B, H), jnp.float32),
        ),
        grid_spec=pltpu.PrefetchScalarGridSpec(
            num_scalar_prefetch=0,
            grid=(2, nT),
            in_specs=[
                pl.BlockSpec((None, tT, B, G),
                             lambda d, j: (d, t_block(d, j), 0, 0)),
                pl.BlockSpec((tT, B, 1),
                             lambda d, j: (t_block(d, j), 0, 0)),
                pl.BlockSpec((None, H, G), lambda d, j: (d, 0, 0)),
            ],
            out_specs=(
                pl.BlockSpec((None, tT, B, H),
                             lambda d, j: (d, t_block(d, j), 0, 0)),
                pl.BlockSpec((None, B, H), lambda d, j: (d, 0, 0)),
                pl.BlockSpec((None, B, H), lambda d, j: (d, 0, 0)),
            ),
        ),
        compiler_params=pltpu.CompilerParams(
            # direction axis is embarrassingly parallel (2 TCs on v7x);
            # time axis carries the recurrence -> "arbitrary".
            dimension_semantics=("parallel", "arbitrary"),
            vmem_limit_bytes=vmem_limit,
        ),
    )(gx, mask_tb1, w_hh)

    y_cat = jnp.concatenate([y[0], y[1]], axis=-1)          # (T_pad, B, 2H)
    return y_cat, h_n, c_n


# ----------------------------------------------------------------------------
# Model: embedding lookup + 2 bidirectional LSTM layers (batch_first I/O).
# ----------------------------------------------------------------------------
class EncoderBiLSTMPallas:
    NUM_LAYERS = 2

    def __init__(self, embed_size, hidden_size, vocab_size, key,
                 matmul_dtype=jnp.bfloat16):
        self.embed_size = embed_size
        self.hidden_size = hidden_size
        self.vocab_size = vocab_size
        self.matmul_dtype = matmul_dtype
        H = hidden_size
        k = 1.0 / math.sqrt(H)

        keys = iter(jax.random.split(key, 1 + self.NUM_LAYERS * 2 * 4 + 2))

        # nn.Embedding default init: N(0, 1)
        self.embedding = jax.random.normal(next(keys), (vocab_size, embed_size),
                                           dtype=jnp.float32)

        # LSTM params stored pre-transposed, bias pre-summed, stacked per layer
        # as (2, D, 4H)/(2, H, 4H)/(2, 1, 4H) -- direction order (fwd, bwd)
        # matches PyTorch's h_n/c_n layout.  No per-forward transposes.
        self.layer_params = []
        for layer in range(self.NUM_LAYERS):
            d_in = embed_size if layer == 0 else 2 * hidden_size
            w_ih_d, w_hh_d, b_d = [], [], []
            for _direction in range(2):
                w_ih_d.append(jax.random.uniform(next(keys), (d_in, 4 * H),
                                                 jnp.float32, -k, k))
                w_hh_d.append(jax.random.uniform(next(keys), (H, 4 * H),
                                                 jnp.float32, -k, k))
                b_ih = jax.random.uniform(next(keys), (4 * H,), jnp.float32, -k, k)
                b_hh = jax.random.uniform(next(keys), (4 * H,), jnp.float32, -k, k)
                b_d.append((b_ih + b_hh)[None, :])
            self.layer_params.append(
                (jnp.stack(w_ih_d), jnp.stack(w_hh_d), jnp.stack(b_d)))

        # self.fc exists in the PyTorch module but is unused in forward(); kept for parity.
        self.fc_w = jax.random.uniform(next(keys), (vocab_size, hidden_size),
                                       jnp.float32, -k, k)
        self.fc_b = jax.random.uniform(next(keys), (vocab_size,), jnp.float32, -k, k)

    def __call__(self, text, text_len, matmul_dtype=None):
        cd = self.matmul_dtype if matmul_dtype is None else matmul_dtype
        B, T = text.shape

        # Embedding lookup (glue; gather stays in XLA).
        # TODO(synk): nn.Dropout(0.3) on embeddings and the LSTM inter-layer dropout
        # are identity here (eval-mode semantics; PyTorch RNG masks not reproducible).
        x = jnp.take(self.embedding, text, axis=0)                  # (B, T, E)

        # One transpose to time-major for the whole 2-layer stack.
        x = jnp.transpose(x, (1, 0, 2)).astype(jnp.float32)         # (T, B, E)

        # time-chunk size for the streaming grid; pad T so it divides evenly.
        tT = min(T, 16)
        T_pad = _round_up(T, tT)
        if T_pad > T:
            x = jnp.pad(x, ((0, T_pad - T), (0, 0), (0, 0)))

        # validity mask (emulates pack_padded_sequence / pad_packed_sequence).
        lengths = text_len.astype(jnp.int32)
        mask = (jnp.arange(T_pad, dtype=jnp.int32)[:, None] < lengths[None, :])
        mask = mask.astype(jnp.float32)[:, :, None]                 # (T_pad, B, 1)

        h_parts, c_parts = [], []
        for w_ih, w_hh, bias in self.layer_params:
            x, h_l, c_l = _bilstm_layer(x, mask, w_ih, w_hh, bias,
                                        tT=tT, matmul_dtype=cd)
            h_parts.append(h_l)                                     # (2, B, H)
            c_parts.append(c_l)

        h_n = jnp.concatenate(h_parts, axis=0)                      # (4, B, H)
        c_n = jnp.concatenate(c_parts, axis=0)

        # pad_packed_sequence would truncate to max(text_len); we return the full
        # padded width to keep the whole forward jittable (padded steps are exact 0).
        # TODO(synk): slice to int(max(text_len)) outside jit if PyTorch's exact
        # output width is required.
        seq_unpacked = jnp.transpose(x[:T], (1, 0, 2))              # (B, T, 2H)
        return seq_unpacked, text_len, (h_n, c_n)


# ----------------------------------------------------------------------------
# Pure-JAX f32 reference (for correctness checking only).
# ----------------------------------------------------------------------------
def _ref_lstm_dir(x_btd, lengths, w_ih_t, w_hh_t, bias, reverse):
    B, T, _ = x_btd.shape
    H = w_hh_t.shape[0]
    h = jnp.zeros((B, H), jnp.float32)
    c = jnp.zeros((B, H), jnp.float32)
    ys = [None] * T
    order = range(T - 1, -1, -1) if reverse else range(T)
    for t in order:
        g = x_btd[:, t] @ w_ih_t + h @ w_hh_t + bias
        i = jax.nn.sigmoid(g[:, :H])
        f = jax.nn.sigmoid(g[:, H:2 * H])
        gg = jnp.tanh(g[:, 2 * H:3 * H])
        o = jax.nn.sigmoid(g[:, 3 * H:])
        c_new = f * c + i * gg
        h_new = o * jnp.tanh(c_new)
        valid = (t < lengths)[:, None]
        h = jnp.where(valid, h_new, h)
        c = jnp.where(valid, c_new, c)
        ys[t] = jnp.where(valid, h_new, 0.0)
    return jnp.stack(ys, axis=1), h, c


def _ref_forward(model, text, text_len):
    x = jnp.take(model.embedding, text, axis=0).astype(jnp.float32)
    hs, cs = [], []
    for w_ih, w_hh, bias in model.layer_params:
        y_f, h_f, c_f = _ref_lstm_dir(x, text_len, w_ih[0], w_hh[0], bias[0], False)
        y_b, h_b, c_b = _ref_lstm_dir(x, text_len, w_ih[1], w_hh[1], bias[1], True)
        x = jnp.concatenate([y_f, y_b], axis=-1)
        hs += [h_f, h_b]
        cs += [c_f, c_b]
    return x, (jnp.stack(hs), jnp.stack(cs))


if __name__ == "__main__":
    B, T = 2, 8
    EMBED, HIDDEN, VOCAB = 32, 32, 50

    key = jax.random.PRNGKey(0)
    k_model, k_text = jax.random.split(key)

    model = EncoderBiLSTMPallas(EMBED, HIDDEN, VOCAB, k_model,
                                matmul_dtype=jnp.bfloat16)

    text = jax.random.randint(k_text, (B, T), 0, VOCAB, dtype=jnp.int32)
    text_len = jnp.array([8, 5], dtype=jnp.int32)   # sorted desc (enforce_sorted)

    # whole forward is jittable (no host sync on text_len)
    fwd_bf16 = jax.jit(lambda t, l: model(t, l))
    fwd_f32 = jax.jit(lambda t, l: model(t, l, matmul_dtype=jnp.float32))

    seq, lens, (h_n, c_n) = jax.block_until_ready(fwd_bf16(text, text_len))

    assert seq.shape == (B, T, 2 * HIDDEN)
    assert h_n.shape == (4, B, HIDDEN) and c_n.shape == (4, B, HIDDEN)
    assert bool(jnp.all(jnp.isfinite(seq))) and bool(jnp.all(jnp.isfinite(h_n)))
    # packed-sequence semantics: padded timesteps of the output are exactly zero
    assert bool(jnp.all(seq[1, 5:] == 0.0))

    # correctness vs pure-JAX f32 reference (exact-parity path)
    seq_ref, (h_ref, c_ref) = _ref_forward(model, text, text_len)
    seq32, _, (h32, c32) = jax.block_until_ready(fwd_f32(text, text_len))
    assert float(jnp.max(jnp.abs(seq32 - seq_ref))) < 1e-3
    assert float(jnp.max(jnp.abs(h32 - h_ref))) < 1e-3
    assert float(jnp.max(jnp.abs(c32 - c_ref))) < 2e-3
    # bf16-matmul fast path stays close to the f32 reference
    assert float(jnp.max(jnp.abs(seq - seq_ref))) < 0.25

    print("KERNEL_OK")
</pallas_src>

<mosaic_0001>
module attributes {stable_mosaic.version = 11 : i64} {
  func.func @kernel(%arg0: i32, %arg1: i32, %arg2: memref<1x8x2x128xf32, #tpu.memory_space<vmem>>, %arg3: memref<8x2x1xf32, #tpu.memory_space<vmem>>, %arg4: memref<1x32x128xf32, #tpu.memory_space<vmem>>, %arg5: memref<1x8x2x32xf32, #tpu.memory_space<vmem>>, %arg6: memref<1x2x32xf32, #tpu.memory_space<vmem>>, %arg7: memref<1x2x32xf32, #tpu.memory_space<vmem>>) attributes {dimension_semantics = [#tpu.dimension_semantics<parallel>, #tpu.dimension_semantics<arbitrary>], iteration_bounds = array<i64: 2, 1>, scalar_prefetch = 0 : i64, scratch_operands = 0 : i64, tpu.core_type = #tpu.core_type<tc>, window_params = [{transform_indices = @transform_0, window_bounds = array<i64: 1, 8, 2, 128>}, {transform_indices = @transform_1, window_bounds = array<i64: 8, 2, 1>}, {transform_indices = @transform_2, window_bounds = array<i64: 1, 32, 128>}, {transform_indices = @transform_3, window_bounds = array<i64: 1, 8, 2, 32>}, {transform_indices = @transform_4, window_bounds = array<i64: 1, 2, 32>}, {transform_indices = @transform_5, window_bounds = array<i64: 1, 2, 32>}]} {
    %c1_i32 = arith.constant 1 : i32
    %0 = arith.cmpi eq, %arg0, %c1_i32 : i32
    %c0_i32 = arith.constant 0 : i32
    %1 = arith.cmpi eq, %arg1, %c0_i32 : i32
    %2 = arith.extui %1 : i1 to i32
    %c0_i32_0 = arith.constant 0 : i32
    %3 = arith.cmpi ne, %2, %c0_i32_0 : i32
    scf.if %3 {
      %cst_136 = arith.constant 0.000000e+00 : f32
      %465 = vector.broadcast %cst_136 : f32 to vector<2x32xf32>
      %c0_137 = arith.constant 0 : index
      %c0_138 = arith.constant 0 : index
      %c0_139 = arith.constant 0 : index
      %466 = vector.load %arg6[%c0_137, %c0_138, %c0_139] : memref<1x2x32xf32, #tpu.memory_space<vmem>>, vector<1x2x32xf32>
      %467 = vector.shape_cast %466 : vector<1x2x32xf32> to vector<2x32xf32>
      %468 = vector.shape_cast %465 : vector<2x32xf32> to vector<1x2x32xf32>
      tpu.vector_store %arg6[%c0_137, %c0_138, %c0_139], %468 {strides = array<i32>} : memref<1x2x32xf32, #tpu.memory_space<vmem>>, vector<1x2x32xf32>,
      %cst_140 = arith.constant 0.000000e+00 : f32
      %469 = vector.broadcast %cst_140 : f32 to vector<2x32xf32>
      %c0_141 = arith.constant 0 : index
      %c0_142 = arith.constant 0 : index
      %c0_143 = arith.constant 0 : index
      %470 = vector.load %arg7[%c0_141, %c0_142, %c0_143] : memref<1x2x32xf32, #tpu.memory_space<vmem>>, vector<1x2x32xf32>
      %471 = vector.shape_cast %470 : vector<1x2x32xf32> to vector<2x32xf32>
      %472 = vector.shape_cast %469 : vector<2x32xf32> to vector<1x2x32xf32>
      tpu.vector_store %arg7[%c0_141, %c0_142, %c0_143], %472 {strides = array<i32>} : memref<1x2x32xf32, #tpu.memory_space<vmem>>, vector<1x2x32xf32>,
    } else {
    }
    %c0 = arith.constant 0 : index
    %c0_1 = arith.constant 0 : index
    %c0_2 = arith.constant 0 : index
    %4 = vector.load %arg4[%c0, %c0_1, %c0_2] : memref<1x32x128xf32, #tpu.memory_space<vmem>>, vector<1x32x128xf32>
    %5 = vector.shape_cast %4 : vector<1x32x128xf32> to vector<32x128xf32>
    %6 = arith.truncf %5 : vector<32x128xf32> to vector<32x128xbf16>
    %c0_3 = arith.constant 0 : index
    %c0_4 = arith.constant 0 : index
    %c0_5 = arith.constant 0 : index
    %7 = vector.load %arg6[%c0_3, %c0_4, %c0_5] : memref<1x2x32xf32, #tpu.memory_space<vmem>>, vector<1x2x32xf32>
    %8 = vector.shape_cast %7 : vector<1x2x32xf32> to vector<2x32xf32>
    %c0_6 = arith.constant 0 : index
    %c0_7 = arith.constant 0 : index
    %c0_8 = arith.constant 0 : index
    %9 = vector.load %arg7[%c0_6, %c0_7, %c0_8] : memref<1x2x32xf32, #tpu.memory_space<vmem>>, vector<1x2x32xf32>
    %10 = vector.shape_cast %9 : vector<1x2x32xf32> to vector<2x32xf32>
    %c0_i32_9 = arith.constant 0 : i32
    %c7_i32 = arith.constant 7 : i32
    %11 = arith.subi %c7_i32, %c0_i32_9 : i32
    %12 = arith.select %0, %11, %c0_i32_9 : i32
    %c0_10 = arith.constant 0 : index
    %13 = arith.index_cast %12 : i32 to index
    %c0_11 = arith.constant 0 : index
    %c0_12 = arith.constant 0 : index
    %14 = vector.load %arg2[%c0_10, %13, %c0_11, %c0_12] : memref<1x8x2x128xf32, #tpu.memory_space<vmem>>, vector<1x1x2x128xf32>
    %15 = vector.shape_cast %14 : vector<1x1x2x128xf32> to vector<2x128xf32>
    %16 = arith.truncf %8 : vector<2x32xf32> to vector<2x32xbf16>
    %cst = arith.constant dense<0.000000e+00> : vector<2x128xf32>
    %17 = tpu.matmul %16, %6, %cst {dimension_numbers = #tpu.dot_dimension_numbers<[1], [0], [0], [1], [0, 0, 1, 1], [], []>} : vector<2x32xbf16>, vector<32x128xbf16>, vector<2x128xf32> -> vector<2x128xf32>
    %18 = arith.addf %15, %17 : vector<2x128xf32>
    %19 = vector.extract_strided_slice %18 {offsets = [0, 0], sizes = [2, 32], strides = [1, 1]} : vector<2x128xf32> to vector<2x32xf32>
    %20 = arith.negf %19 : vector<2x32xf32>
    %21 = math.exp %20 : vector<2x32xf32>
    %cst_13 = arith.constant 1.000000e+00 : f32
    %22 = vector.broadcast %cst_13 : f32 to vector<2x32xf32>
    %23 = arith.addf %22, %21 : vector<2x32xf32>
    %24 = arith.divf %22, %23 : vector<2x32xf32>
    %25 = vector.extract_strided_slice %18 {offsets = [0, 32], sizes = [2, 32], strides = [1, 1]} : vector<2x128xf32> to vector<2x32xf32>
    %26 = arith.negf %25 : vector<2x32xf32>
    %27 = math.exp %26 : vector<2x32xf32>
    %cst_14 = arith.constant 1.000000e+00 : f32
    %28 = vector.broadcast %cst_14 : f32 to vector<2x32xf32>
    %29 = arith.addf %28, %27 : vector<2x32xf32>
    %30 = arith.divf %28, %29 : vector<2x32xf32>
    %31 = vector.extract_strided_slice %18 {offsets = [0, 64], sizes = [2, 32], strides = [1, 1]} : vector<2x128xf32> to vector<2x32xf32>
    %32 = math.tanh %31 : vector<2x32xf32>
    %33 = vector.extract_strided_slice %18 {offsets = [0, 96], sizes = [2, 32], strides = [1, 1]} : vector<2x128xf32> to vector<2x32xf32>
    %34 = arith.negf %33 : vector<2x32xf32>
    %35 = math.exp %34 : vector<2x32xf32>
    %cst_15 = arith.constant 1.000000e+00 : f32
    %36 = vector.broadcast %cst_15 : f32 to vector<2x32xf32>
    %37 = arith.addf %36, %35 : vector<2x32xf32>
    %38 = arith.divf %36, %37 : vector<2x32xf32>
    %39 = arith.mulf %30, %10 : vector<2x32xf32>
    %40 = arith.mulf %24, %32 : vector<2x32xf32>
    %41 = arith.addf %39, %40 : vector<2x32xf32>
    %42 = math.tanh %41 : vector<2x32xf32>
    %43 = arith.mulf %38, %42 : vector<2x32xf32>
    %44 = arith.index_cast %12 : i32 to index
    %c0_16 = arith.constant 0 : index
    %c0_17 = arith.constant 0 : index
    %45 = vector.load %arg3[%44, %c0_16, %c0_17] : memref<8x2x1xf32, #tpu.memory_space<vmem>>, vector<1x2x1xf32>
    %46 = vector.shape_cast %45 : vector<1x2x1xf32> to vector<2x1xf32>
    %47 = vector.broadcast %46 : vector<2x1xf32> to vector<2x32xf32>
    %48 = arith.mulf %47, %43 : vector<2x32xf32>
    %cst_18 = arith.constant 1.000000e+00 : f32
    %49 = vector.broadcast %cst_18 : f32 to vector<2x1xf32>
    %50 = arith.subf %49, %46 : vector<2x1xf32>
    %51 = vector.broadcast %50 : vector<2x1xf32> to vector<2x32xf32>
    %52 = arith.mulf %51, %8 : vector<2x32xf32>
    %53 = arith.addf %48, %52 : vector<2x32xf32>
    %54 = vector.broadcast %46 : vector<2x1xf32> to vector<2x32xf32>
    %55 = arith.mulf %54, %41 : vector<2x32xf32>
    %cst_19 = arith.constant 1.000000e+00 : f32
    %56 = vector.broadcast %cst_19 : f32 to vector<2x1xf32>
    %57 = arith.subf %56, %46 : vector<2x1xf32>
    %58 = vector.broadcast %57 : vector<2x1xf32> to vector<2x32xf32>
    %59 = arith.mulf %58, %10 : vector<2x32xf32>
    %60 = arith.addf %55, %59 : vector<2x32xf32>
    %61 = vector.broadcast %46 : vector<2x1xf32> to vector<2x32xf32>
    %62 = arith.mulf %61, %43 : vector<2x32xf32>
    %c0_20 = arith.constant 0 : index
    %63 = arith.index_cast %12 : i32 to index
    %c0_21 = arith.constant 0 : index
    %c0_22 = arith.constant 0 : index
    %64 = vector.load %arg5[%c0_20, %63, %c0_21, %c0_22] : memref<1x8x2x32xf32, #tpu.memory_space<vmem>>, vector<1x1x2x32xf32>
    %65 = vector.shape_cast %64 : vector<1x1x2x32xf32> to vector<2x32xf32>
    %66 = vector.shape_cast %62 : vector<2x32xf32> to vector<1x1x2x32xf32>
    tpu.vector_store %arg5[%c0_20, %63, %c0_21, %c0_22], %66 {strides = array<i32>} : memref<1x8x2x32xf32, #tpu.memory_space<vmem>>, vector<1x1x2x32xf32>,
    %c1_i32_23 = arith.constant 1 : i32
    %c7_i32_24 = arith.constant 7 : i32
    %67 = arith.subi %c7_i32_24, %c1_i32_23 : i32
    %68 = arith.select %0, %67, %c1_i32_23 : i32
    %c0_25 = arith.constant 0 : index
    %69 = arith.index_cast %68 : i32 to index
    %c0_26 = arith.constant 0 : index
    %c0_27 = arith.constant 0 : index
    %70 = vector.load %arg2[%c0_25, %69, %c0_26, %c0_27] : memref<1x8x2x128xf32, #tpu.memory_space<vmem>>, vector<1x1x2x128xf32>
    %71 = vector.shape_cast %70 : vector<1x1x2x128xf32> to vector<2x128xf32>
    %72 = arith.truncf %53 : vector<2x32xf32> to vector<2x32xbf16>
    %cst_28 = arith.constant dense<0.000000e+00> : vector<2x128xf32>
    %73 = tpu.matmul %72, %6, %cst_28 {dimension_numbers = #tpu.dot_dimension_numbers<[1], [0], [0], [1], [0, 0, 1, 1], [], []>} : vector<2x32xbf16>, vector<32x128xbf16>, vector<2x128xf32> -> vector<2x128xf32>
    %74 = arith.addf %71, %73 : vector<2x128xf32>
    %75 = vector.extract_strided_slice %74 {offsets = [0, 0], sizes = [2, 32], strides = [1, 1]} : vector<2x128xf32> to vector<2x32xf32>
    %76 = arith.negf %75 : vector<2x32xf32>
    %77 = math.exp %76 : vector<2x32xf32>
    %cst_29 = arith.constant 1.000000e+00 : f32
    %78 = vector.broadcast %cst_29 : f32 to vector<2x32xf32>
    %79 = arith.addf %78, %77 : vector<2x32xf32>
    %80 = arith.divf %78, %79 : vector<2x32xf32>
    %81 = vector.extract_strided_slice %74 {offsets = [0, 32], sizes = [2, 32], strides = [1, 1]} : vector<2x128xf32> to vector<2x32xf32>
    %82 = arith.negf %81 : vector<2x32xf32>
    %83 = math.exp %82 : vector<2x32xf32>
    %cst_30 = arith.constant 1.000000e+00 : f32
    %84 = vector.broadcast %cst_30 : f32 to vector<2x32xf32>
    %85 = arith.addf %84, %83 : vector<2x32xf32>
    %86 = arith.divf %84, %85 : vector<2x32xf32>
    %87 = vector.extract_strided_slice %74 {offsets = [0, 64], sizes = [2, 32], strides = [1, 1]} : vector<2x128xf32> to vector<2x32xf32>
    %88 = math.tanh %87 : vector<2x32xf32>
    %89 = vector.extract_strided_slice %74 {offsets = [0, 96], sizes = [2, 32], strides = [1, 1]} : vector<2x128xf32> to vector<2x32xf32>
    %90 = arith.negf %89 : vector<2x32xf32>
    %91 = math.exp %90 : vector<2x32xf32>
    %cst_31 = arith.constant 1.000000e+00 : f32
    %92 = vector.broadcast %cst_31 : f32 to vector<2x32xf32>
    %93 = arith.addf %92, %91 : vector<2x32xf32>
    %94 = arith.divf %92, %93 : vector<2x32xf32>
    %95 = arith.mulf %86, %60 : vector<2x32xf32>
    %96 = arith.mulf %80, %88 : vector<2x32xf32>
    %97 = arith.addf %95, %96 : vector<2x32xf32>
    %98 = math.tanh %97 : vector<2x32xf32>
    %99 = arith.mulf %94, %98 : vector<2x32xf32>
    %100 = arith.index_cast %68 : i32 to index
    %c0_32 = arith.constant 0 : index
    %c0_33 = arith.constant 0 : index
    %101 = vector.load %arg3[%100, %c0_32, %c0_33] : memref<8x2x1xf32, #tpu.memory_space<vmem>>, vector<1x2x1xf32>
    %102 = vector.shape_cast %101 : vector<1x2x1xf32> to vector<2x1xf32>
    %103 = vector.broadcast %102 : vector<2x1xf32> to vector<2x32xf32>
    %104 = arith.mulf %103, %99 : vector<2x32xf32>
    %cst_34 = arith.constant 1.000000e+00 : f32
    %105 = vector.broadcast %cst_34 : f32 to vector<2x1xf32>
    %106 = arith.subf %105, %102 : vector<2x1xf32>
    %107 = vector.broadcast %106 : vector<2x1xf32> to vector<2x32xf32>
    %108 = arith.mulf %107, %53 : vector<2x32xf32>
    %109 = arith.addf %104, %108 : vector<2x32xf32>
    %110 = vector.broadcast %102 : vector<2x1xf32> to vector<2x32xf32>
    %111 = arith.mulf %110, %97 : vector<2x32xf32>
    %cst_35 = arith.constant 1.000000e+00 : f32
    %112 = vector.broadcast %cst_35 : f32 to vector<2x1xf32>
    %113 = arith.subf %112, %102 : vector<2x1xf32>
    %114 = vector.broadcast %113 : vector<2x1xf32> to vector<2x32xf32>
    %115 = arith.mulf %114, %60 : vector<2x32xf32>
    %116 = arith.addf %111, %115 : vector<2x32xf32>
    %117 = vector.broadcast %102 : vector<2x1xf32> to vector<2x32xf32>
    %118 = arith.mulf %117, %99 : vector<2x32xf32>
    %c0_36 = arith.constant 0 : index
    %119 = arith.index_cast %68 : i32 to index
    %c0_37 = arith.constant 0 : index
    %c0_38 = arith.constant 0 : index
    %120 = vector.load %arg5[%c0_36, %119, %c0_37, %c0_38] : memref<1x8x2x32xf32, #tpu.memory_space<vmem>>, vector<1x1x2x32xf32>
    %121 = vector.shape_cast %120 : vector<1x1x2x32xf32> to vector<2x32xf32>
    %122 = vector.shape_cast %118 : vector<2x32xf32> to vector<1x1x2x32xf32>
    tpu.vector_store %arg5[%c0_36, %119, %c0_37, %c0_38], %122 {strides = array<i32>} : memref<1x8x2x32xf32, #tpu.memory_space<vmem>>, vector<1x1x2x32xf32>,
    %c2_i32 = arith.constant 2 : i32
    %c7_i32_39 = arith.constant 7 : i32
    %123 = arith.subi %c7_i32_39, %c2_i32 : i32
    %124 = arith.select %0, %123, %c2_i32 : i32
    %c0_40 = arith.constant 0 : index
    %125 = arith.index_cast %124 : i32 to index
    %c0_41 = arith.constant 0 : index
    %c0_42 = arith.constant 0 : index
    %126 = vector.load %arg2[%c0_40, %125, %c0_41, %c0_42] : memref<1x8x2x128xf32, #tpu.memory_space<vmem>>, vector<1x1x2x128xf32>
    %127 = vector.shape_cast %126 : vector<1x1x2x128xf32> to vector<2x128xf32>
    %128 = arith.truncf %109 : vector<2x32xf32> to vector<2x32xbf16>
    %cst_43 = arith.constant dense<0.000000e+00> : vector<2x128xf32>
    %129 = tpu.matmul %128, %6, %cst_43 {dimension_numbers = #tpu.dot_dimension_numbers<[1], [0], [0], [1], [0, 0, 1, 1], [], []>} : vector<2x32xbf16>, vector<32x128xbf16>, vector<2x128xf32> -> vector<2x128xf32>
    %130 = arith.addf %127, %129 : vector<2x128xf32>
    %131 = vector.extract_strided_slice %130 {offsets = [0, 0], sizes = [2, 32], strides = [1, 1]} : vector<2x128xf32> to vector<2x32xf32>
    %132 = arith.negf %131 : vector<2x32xf32>
    %133 = math.exp %132 : vector<2x32xf32>
    %cst_44 = arith.constant 1.000000e+00 : f32
    %134 = vector.broadcast %cst_44 : f32 to vector<2x32xf32>
    %135 = arith.addf %134, %133 : vector<2x32xf32>
    %136 = arith.divf %134, %135 : vector<2x32xf32>
    %137 = vector.extract_strided_slice %130 {offsets = [0, 32], sizes = [2, 32], strides = [1, 1]} : vector<2x128xf32> to vector<2x32xf32>
    %138 = arith.negf %137 : vector<2x32xf32>
    %139 = math.exp %138 : vector<2x32xf32>
    %cst_45 = arith.constant 1.000000e+00 : f32
    %140 = vector.broadcast %cst_45 : f32 to vector<2x32xf32>
    %141 = arith.addf %140, %139 : vector<2x32xf32>
    %142 = arith.divf %140, %141 : vector<2x32xf32>
    %143 = vector.extract_strided_slice %130 {offsets = [0, 64], sizes = [2, 32], strides = [1, 1]} : vector<2x128xf32> to vector<2x32xf32>
    %144 = math.tanh %143 : vector<2x32xf32>
    %145 = vector.extract_strided_slice %130 {offsets = [0, 96], sizes = [2, 32], strides = [1, 1]} : vector<2x128xf32> to vector<2x32xf32>
    %146 = arith.negf %145 : vector<2x32xf32>
    %147 = math.exp %146 : vector<2x32xf32>
    %cst_46 = arith.constant 1.000000e+00 : f32
    %148 = vector.broadcast %cst_46 : f32 to vector<2x32xf32>
    %149 = arith.addf %148, %147 : vector<2x32xf32>
    %150 = arith.divf %148, %149 : vector<2x32xf32>
    %151 = arith.mulf %142, %116 : vector<2x32xf32>
    %152 = arith.mulf %136, %144 : vector<2x32xf32>
    %153 = arith.addf %151, %152 : vector<2x32xf32>
    %154 = math.tanh %153 : vector<2x32xf32>
    %155 = arith.mulf %150, %154 : vector<2x32xf32>
    %156 = arith.index_cast %124 : i32 to index
    %c0_47 = arith.constant 0 : index
    %c0_48 = arith.constant 0 : index
    %157 = vector.load %arg3[%156, %c0_47, %c0_48] : memref<8x2x1xf32, #tpu.memory_space<vmem>>, vector<1x2x1xf32>
    %158 = vector.shape_cast %157 : vector<1x2x1xf32> to vector<2x1xf32>
    %159 = vector.broadcast %158 : vector<2x1xf32> to vector<2x32xf32>
    %160 = arith.mulf %159, %155 : vector<2x32xf32>
    %cst_49 = arith.constant 1.000000e+00 : f32
    %161 = vector.broadcast %cst_49 : f32 to vector<2x1xf32>
    %162 = arith.subf %161, %158 : vector<2x1xf32>
    %163 = vector.broadcast %162 : vector<2x1xf32> to vector<2x32xf32>
    %164 = arith.mulf %163, %109 : vector<2x32xf32>
    %165 = arith.addf %160, %164 : vector<2x32xf32>
    %166 = vector.broadcast %158 : vector<2x1xf32> to vector<2x32xf32>
    %167 = arith.mulf %166, %153 : vector<2x32xf32>
    %cst_50 = arith.constant 1.000000e+00 : f32
    %168 = vector.broadcast %cst_50 : f32 to vector<2x1xf32>
    %169 = arith.subf %168, %158 : vector<2x1xf32>
    %170 = vector.broadcast %169 : vector<2x1xf32> to vector<2x32xf32>
    %171 = arith.mulf %170, %116 : vector<2x32xf32>
    %172 = arith.addf %167, %171 : vector<2x32xf32>
    %173 = vector.broadcast %158 : vector<2x1xf32> to vector<2x32xf32>
    %174 = arith.mulf %173, %155 : vector<2x32xf32>
    %c0_51 = arith.constant 0 : index
    %175 = arith.index_cast %124 : i32 to index
    %c0_52 = arith.constant 0 : index
    %c0_53 = arith.constant 0 : index
    %176 = vector.load %arg5[%c0_51, %175, %c0_52, %c0_53] : memref<1x8x2x32xf32, #tpu.memory_space<vmem>>, vector<1x1x2x32xf32>
    %177 = vector.shape_cast %176 : vector<1x1x2x32xf32> to vector<2x32xf32>
    %178 = vector.shape_cast %174 : vector<2x32xf32> to vector<1x1x2x32xf32>
    tpu.vector_store %arg5[%c0_51, %175, %c0_52, %c0_53], %178 {strides = array<i32>} : memref<1x8x2x32xf32, #tpu.memory_space<vmem>>, vector<1x1x2x32xf32>,
    %c3_i32 = arith.constant 3 : i32
    %c7_i32_54 = arith.constant 7 : i32
    %179 = arith.subi %c7_i32_54, %c3_i32 : i32
    %180 = arith.select %0, %179, %c3_i32 : i32
    %c0_55 = arith.constant 0 : index
    %181 = arith.index_cast %180 : i32 to index
    %c0_56 = arith.constant 0 : index
    %c0_57 = arith.constant 0 : index
    %182 = vector.load %arg2[%c0_55, %181, %c0_56, %c0_57] : memref<1x8x2x128xf32, #tpu.memory_space<vmem>>, vector<1x1x2x128xf32>
    %183 = vector.shape_cast %182 : vector<1x1x2x128xf32> to vector<2x128xf32>
    %184 = arith.truncf %165 : vector<2x32xf32> to vector<2x32xbf16>
    %cst_58 = arith.constant dense<0.000000e+00> : vector<2x128xf32>
    %185 = tpu.matmul %184, %6, %cst_58 {dimension_numbers = #tpu.dot_dimension_numbers<[1], [0], [0], [1], [0, 0, 1, 1], [], []>} : vector<2x32xbf16>, vector<32x128xbf16>, vector<2x128xf32> -> vector<2x128xf32>
    %186 = arith.addf %183, %185 : vector<2x128xf32>
    %187 = vector.extract_strided_slice %186 {offsets = [0, 0], sizes = [2, 32], strides = [1, 1]} : vector<2x128xf32> to vector<2x32xf32>
    %188 = arith.negf %187 : vector<2x32xf32>
    %189 = math.exp %188 : vector<2x32xf32>
    %cst_59 = arith.constant 1.000000e+00 : f32
    %190 = vector.broadcast %cst_59 : f32 to vector<2x32xf32>
    %191 = arith.addf %190, %189 : vector<2x32xf32>
    %192 = arith.divf %190, %191 : vector<2x32xf32>
    %193 = vector.extract_strided_slice %186 {offsets = [0, 32], sizes = [2, 32], strides = [1, 1]} : vector<2x128xf32> to vector<2x32xf32>
    %194 = arith.negf %193 : vector<2x32xf32>
    %195 = math.exp %194 : vector<2x32xf32>
    %cst_60 = arith.constant 1.000000e+00 : f32
    %196 = vector.broadcast %cst_60 : f32 to vector<2x32xf32>
    %197 = arith.addf %196, %195 : vector<2x32xf32>
    %198 = arith.divf %196, %197 : vector<2x32xf32>
    %199 = vector.extract_strided_slice %186 {offsets = [0, 64], sizes = [2, 32], strides = [1, 1]} : vector<2x128xf32> to vector<2x32xf32>
    %200 = math.tanh %199 : vector<2x32xf32>
    %201 = vector.extract_strided_slice %186 {offsets = [0, 96], sizes = [2, 32], strides = [1, 1]} : vector<2x128xf32> to vector<2x32xf32>
    %202 = arith.negf %201 : vector<2x32xf32>
    %203 = math.exp %202 : vector<2x32xf32>
    %cst_61 = arith.constant 1.000000e+00 : f32
    %204 = vector.broadcast %cst_61 : f32 to vector<2x32xf32>
    %205 = arith.addf %204, %203 : vector<2x32xf32>
    %206 = arith.divf %204, %205 : vector<2x32xf32>
    %207 = arith.mulf %198, %172 : vector<2x32xf32>
    %208 = arith.mulf %192, %200 : vector<2x32xf32>
    %209 = arith.addf %207, %208 : vector<2x32xf32>
    %210 = math.tanh %209 : vector<2x32xf32>
    %211 = arith.mulf %206, %210 : vector<2x32xf32>
    %212 = arith.index_cast %180 : i32 to index
    %c0_62 = arith.constant 0 : index
    %c0_63 = arith.constant 0 : index
    %213 = vector.load %arg3[%212, %c0_62, %c0_63] : memref<8x2x1xf32, #tpu.memory_space<vmem>>, vector<1x2x1xf32>
    %214 = vector.shape_cast %213 : vector<1x2x1xf32> to vector<2x1xf32>
    %215 = vector.broadcast %214 : vector<2x1xf32> to vector<2x32xf32>
    %216 = arith.mulf %215, %211 : vector<2x32xf32>
    %cst_64 = arith.constant 1.000000e+00 : f32
    %217 = vector.broadcast %cst_64 : f32 to vector<2x1xf32>
    %218 = arith.subf %217, %214 : vector<2x1xf32>
    %219 = vector.broadcast %218 : vector<2x1xf32> to vector<2x32xf32>
    %220 = arith.mulf %219, %165 : vector<2x32xf32>
    %221 = arith.addf %216, %220 : vector<2x32xf32>
    %222 = vector.broadcast %214 : vector<2x1xf32> to vector<2x32xf32>
    %223 = arith.mulf %222, %209 : vector<2x32xf32>
    %cst_65 = arith.constant 1.000000e+00 : f32
    %224 = vector.broadcast %cst_65 : f32 to vector<2x1xf32>
    %225 = arith.subf %224, %214 : vector<2x1xf32>
    %226 = vector.broadcast %225 : vector<2x1xf32> to vector<2x32xf32>
    %227 = arith.mulf %226, %172 : vector<2x32xf32>
    %228 = arith.addf %223, %227 : vector<2x32xf32>
    %229 = vector.broadcast %214 : vector<2x1xf32> to vector<2x32xf32>
    %230 = arith.mulf %229, %211 : vector<2x32xf32>
    %c0_66 = arith.constant 0 : index
    %231 = arith.index_cast %180 : i32 to index
    %c0_67 = arith.constant 0 : index
    %c0_68 = arith.constant 0 : index
    %232 = vector.load %arg5[%c0_66, %231, %c0_67, %c0_68] : memref<1x8x2x32xf32, #tpu.memory_space<vmem>>, vector<1x1x2x32xf32>
    %233 = vector.shape_cast %232 : vector<1x1x2x32xf32> to vector<2x32xf32>
    %234 = vector.shape_cast %230 : vector<2x32xf32> to vector<1x1x2x32xf32>
    tpu.vector_store %arg5[%c0_66, %231, %c0_67, %c0_68], %234 {strides = array<i32>} : memref<1x8x2x32xf32, #tpu.memory_space<vmem>>, vector<1x1x2x32xf32>,
    %c4_i32 = arith.constant 4 : i32
    %c7_i32_69 = arith.constant 7 : i32
    %235 = arith.subi %c7_i32_69, %c4_i32 : i32
    %236 = arith.select %0, %235, %c4_i32 : i32
    %c0_70 = arith.constant 0 : index
    %237 = arith.index_cast %236 : i32 to index
    %c0_71 = arith.constant 0 : index
    %c0_72 = arith.constant 0 : index
    %238 = vector.load %arg2[%c0_70, %237, %c0_71, %c0_72] : memref<1x8x2x128xf32, #tpu.memory_space<vmem>>, vector<1x1x2x128xf32>
    %239 = vector.shape_cast %238 : vector<1x1x2x128xf32> to vector<2x128xf32>
    %240 = arith.truncf %221 : vector<2x32xf32> to vector<2x32xbf16>
    %cst_73 = arith.constant dense<0.000000e+00> : vector<2x128xf32>
    %241 = tpu.matmul %240, %6, %cst_73 {dimension_numbers = #tpu.dot_dimension_numbers<[1], [0], [0], [1], [0, 0, 1, 1], [], []>} : vector<2x32xbf16>, vector<32x128xbf16>, vector<2x128xf32> -> vector<2x128xf32>
    %242 = arith.addf %239, %241 : vector<2x128xf32>
    %243 = vector.extract_strided_slice %242 {offsets = [0, 0], sizes = [2, 32], strides = [1, 1]} : vector<2x128xf32> to vector<2x32xf32>
    %244 = arith.negf %243 : vector<2x32xf32>
    %245 = math.exp %244 : vector<2x32xf32>
    %cst_74 = arith.constant 1.000000e+00 : f32
    %246 = vector.broadcast %cst_74 : f32 to vector<2x32xf32>
    %247 = arith.addf %246, %245 : vector<2x32xf32>
    %248 = arith.divf %246, %247 : vector<2x32xf32>
    %249 = vector.extract_strided_slice %242 {offsets = [0, 32], sizes = [2, 32], strides = [1, 1]} : vector<2x128xf32> to vector<2x32xf32>
    %250 = arith.negf %249 : vector<2x32xf32>
    %251 = math.exp %250 : vector<2x32xf32>
    %cst_75 = arith.constant 1.000000e+00 : f32
    %252 = vector.broadcast %cst_75 : f32 to vector<2x32xf32>
    %253 = arith.addf %252, %251 : vector<2x32xf32>
    %254 = arith.divf %252, %253 : vector<2x32xf32>
    %255 = vector.extract_strided_slice %242 {offsets = [0, 64], sizes = [2, 32], strides = [1, 1]} : vector<2x128xf32> to vector<2x32xf32>
    %256 = math.tanh %255 : vector<2x32xf32>
    %257 = vector.extract_strided_slice %242 {offsets = [0, 96], sizes = [2, 32], strides = [1, 1]} : vector<2x128xf32> to vector<2x32xf32>
    %258 = arith.negf %257 : vector<2x32xf32>
    %259 = math.exp %258 : vector<2x32xf32>
    %cst_76 = arith.constant 1.000000e+00 : f32
    %260 = vector.broadcast %cst_76 : f32 to vector<2x32xf32>
    %261 = arith.addf %260, %259 : vector<2x32xf32>
    %262 = arith.divf %260, %261 : vector<2x32xf32>
    %263 = arith.mulf %254, %228 : vector<2x32xf32>
    %264 = arith.mulf %248, %256 : vector<2x32xf32>
    %265 = arith.addf %263, %264 : vector<2x32xf32>
    %266 = math.tanh %265 : vector<2x32xf32>
    %267 = arith.mulf %262, %266 : vector<2x32xf32>
    %268 = arith.index_cast %236 : i32 to index
    %c0_77 = arith.constant 0 : index
    %c0_78 = arith.constant 0 : index
    %269 = vector.load %arg3[%268, %c0_77, %c0_78] : memref<8x2x1xf32, #tpu.memory_space<vmem>>, vector<1x2x1xf32>
    %270 = vector.shape_cast %269 : vector<1x2x1xf32> to vector<2x1xf32>
    %271 = vector.broadcast %270 : vector<2x1xf32> to vector<2x32xf32>
    %272 = arith.mulf %271, %267 : vector<2x32xf32>
    %cst_79 = arith.constant 1.000000e+00 : f32
    %273 = vector.broadcast %cst_79 : f32 to vector<2x1xf32>
    %274 = arith.subf %273, %270 : vector<2x1xf32>
    %275 = vector.broadcast %274 : vector<2x1xf32> to vector<2x32xf32>
    %276 = arith.mulf %275, %221 : vector<2x32xf32>
    %277 = arith.addf %272, %276 : vector<2x32xf32>
    %278 = vector.broadcast %270 : vector<2x1xf32> to vector<2x32xf32>
    %279 = arith.mulf %278, %265 : vector<2x32xf32>
    %cst_80 = arith.constant 1.000000e+00 : f32
    %280 = vector.broadcast %cst_80 : f32 to vector<2x1xf32>
    %281 = arith.subf %280, %270 : vector<2x1xf32>
    %282 = vector.broadcast %281 : vector<2x1xf32> to vector<2x32xf32>
    %283 = arith.mulf %282, %228 : vector<2x32xf32>
    %284 = arith.addf %279, %283 : vector<2x32xf32>
    %285 = vector.broadcast %270 : vector<2x1xf32> to vector<2x32xf32>
    %286 = arith.mulf %285, %267 : vector<2x32xf32>
    %c0_81 = arith.constant 0 : index
    %287 = arith.index_cast %236 : i32 to index
    %c0_82 = arith.constant 0 : index
    %c0_83 = arith.constant 0 : index
    %288 = vector.load %arg5[%c0_81, %287, %c0_82, %c0_83] : memref<1x8x2x32xf32, #tpu.memory_space<vmem>>, vector<1x1x2x32xf32>
    %289 = vector.shape_cast %288 : vector<1x1x2x32xf32> to vector<2x32xf32>
    %290 = vector.shape_cast %286 : vector<2x32xf32> to vector<1x1x2x32xf32>
    tpu.vector_store %arg5[%c0_81, %287, %c0_82, %c0_83], %290 {strides = array<i32>} : memref<1x8x2x32xf32, #tpu.memory_space<vmem>>, vector<1x1x2x32xf32>,
    %c5_i32 = arith.constant 5 : i32
    %c7_i32_84 = arith.constant 7 : i32
    %291 = arith.subi %c7_i32_84, %c5_i32 : i32
    %292 = arith.select %0, %291, %c5_i32 : i32
    %c0_85 = arith.constant 0 : index
    %293 = arith.index_cast %292 : i32 to index
    %c0_86 = arith.constant 0 : index
    %c0_87 = arith.constant 0 : index
    %294 = vector.load %arg2[%c0_85, %293, %c0_86, %c0_87] : memref<1x8x2x128xf32, #tpu.memory_space<vmem>>, vector<1x1x2x128xf32>
    %295 = vector.shape_cast %294 : vector<1x1x2x128xf32> to vector<2x128xf32>
    %296 = arith.truncf %277 : vector<2x32xf32> to vector<2x32xbf16>
    %cst_88 = arith.constant dense<0.000000e+00> : vector<2x128xf32>
    %297 = tpu.matmul %296, %6, %cst_88 {dimension_numbers = #tpu.dot_dimension_numbers<[1], [0], [0], [1], [0, 0, 1, 1], [], []>} : vector<2x32xbf16>, vector<32x128xbf16>, vector<2x128xf32> -> vector<2x128xf32>
    %298 = arith.addf %295, %297 : vector<2x128xf32>
    %299 = vector.extract_strided_slice %298 {offsets = [0, 0], sizes = [2, 32], strides = [1, 1]} : vector<2x128xf32> to vector<2x32xf32>
    %300 = arith.negf %299 : vector<2x32xf32>
    %301 = math.exp %300 : vector<2x32xf32>
    %cst_89 = arith.constant 1.000000e+00 : f32
    %302 = vector.broadcast %cst_89 : f32 to vector<2x32xf32>
    %303 = arith.addf %302, %301 : vector<2x32xf32>
    %304 = arith.divf %302, %303 : vector<2x32xf32>
    %305 = vector.extract_strided_slice %298 {offsets = [0, 32], sizes = [2, 32], strides = [1, 1]} : vector<2x128xf32> to vector<2x32xf32>
    %306 = arith.negf %305 : vector<2x32xf32>
    %307 = math.exp %306 : vector<2x32xf32>
    %cst_90 = arith.constant 1.000000e+00 : f32
    %308 = vector.broadcast %cst_90 : f32 to vector<2x32xf32>
    %309 = arith.addf %308, %307 : vector<2x32xf32>
    %310 = arith.divf %308, %309 : vector<2x32xf32>
    %311 = vector.extract_strided_slice %298 {offsets = [0, 64], sizes = [2, 32], strides = [1, 1]} : vector<2x128xf32> to vector<2x32xf32>
    %312 = math.tanh %311 : vector<2x32xf32>
    %313 = vector.extract_strided_slice %298 {offsets = [0, 96], sizes = [2, 32], strides = [1, 1]} : vector<2x128xf32> to vector<2x32xf32>
    %314 = arith.negf %313 : vector<2x32xf32>
    %315 = math.exp %314 : vector<2x32xf32>
    %cst_91 = arith.constant 1.000000e+00 : f32
    %316 = vector.broadcast %cst_91 : f32 to vector<2x32xf32>
    %317 = arith.addf %316, %315 : vector<2x32xf32>
    %318 = arith.divf %316, %317 : vector<2x32xf32>
    %319 = arith.mulf %310, %284 : vector<2x32xf32>
    %320 = arith.mulf %304, %312 : vector<2x32xf32>
    %321 = arith.addf %319, %320 : vector<2x32xf32>
    %322 = math.tanh %321 : vector<2x32xf32>
    %323 = arith.mulf %318, %322 : vector<2x32xf32>
    %324 = arith.index_cast %292 : i32 to index
    %c0_92 = arith.constant 0 : index
    %c0_93 = arith.constant 0 : index
    %325 = vector.load %arg3[%324, %c0_92, %c0_93] : memref<8x2x1xf32, #tpu.memory_space<vmem>>, vector<1x2x1xf32>
    %326 = vector.shape_cast %325 : vector<1x2x1xf32> to vector<2x1xf32>
    %327 = vector.broadcast %326 : vector<2x1xf32> to vector<2x32xf32>
    %328 = arith.mulf %327, %323 : vector<2x32xf32>
    %cst_94 = arith.constant 1.000000e+00 : f32
    %329 = vector.broadcast %cst_94 : f32 to vector<2x1xf32>
    %330 = arith.subf %329, %326 : vector<2x1xf32>
    %331 = vector.broadcast %330 : vector<2x1xf32> to vector<2x32xf32>
    %332 = arith.mulf %331, %277 : vector<2x32xf32>
    %333 = arith.addf %328, %332 : vector<2x32xf32>
    %334 = vector.broadcast %326 : vector<2x1xf32> to vector<2x32xf32>
    %335 = arith.mulf %334, %321 : vector<2x32xf32>
    %cst_95 = arith.constant 1.000000e+00 : f32
    %336 = vector.broadcast %cst_95 : f32 to vector<2x1xf32>
    %337 = arith.subf %336, %326 : vector<2x1xf32>
    %338 = vector.broadcast %337 : vector<2x1xf32> to vector<2x32xf32>
    %339 = arith.mulf %338, %284 : vector<2x32xf32>
    %340 = arith.addf %335, %339 : vector<2x32xf32>
    %341 = vector.broadcast %326 : vector<2x1xf32> to vector<2x32xf32>
    %342 = arith.mulf %341, %323 : vector<2x32xf32>
    %c0_96 = arith.constant 0 : index
    %343 = arith.index_cast %292 : i32 to index
    %c0_97 = arith.constant 0 : index
    %c0_98 = arith.constant 0 : index
    %344 = vector.load %arg5[%c0_96, %343, %c0_97, %c0_98] : memref<1x8x2x32xf32, #tpu.memory_space<vmem>>, vector<1x1x2x32xf32>
    %345 = vector.shape_cast %344 : vector<1x1x2x32xf32> to vector<2x32xf32>
    %346 = vector.shape_cast %342 : vector<2x32xf32> to vector<1x1x2x32xf32>
    tpu.vector_store %arg5[%c0_96, %343, %c0_97, %c0_98], %346 {strides = array<i32>} : memref<1x8x2x32xf32, #tpu.memory_space<vmem>>, vector<1x1x2x32xf32>,
    %c6_i32 = arith.constant 6 : i32
    %c7_i32_99 = arith.constant 7 : i32
    %347 = arith.subi %c7_i32_99, %c6_i32 : i32
    %348 = arith.select %0, %347, %c6_i32 : i32
    %c0_100 = arith.constant 0 : index
    %349 = arith.index_cast %348 : i32 to index
    %c0_101 = arith.constant 0 : index
    %c0_102 = arith.constant 0 : index
    %350 = vector.load %arg2[%c0_100, %349, %c0_101, %c0_102] : memref<1x8x2x128xf32, #tpu.memory_space<vmem>>, vector<1x1x2x128xf32>
    %351 = vector.shape_cast %350 : vector<1x1x2x128xf32> to vector<2x128xf32>
    %352 = arith.truncf %333 : vector<2x32xf32> to vector<2x32xbf16>
    %cst_103 = arith.constant dense<0.000000e+00> : vector<2x128xf32>
    %353 = tpu.matmul %352, %6, %cst_103 {dimension_numbers = #tpu.dot_dimension_numbers<[1], [0], [0], [1], [0, 0, 1, 1], [], []>} : vector<2x32xbf16>, vector<32x128xbf16>, vector<2x128xf32> -> vector<2x128xf32>
    %354 = arith.addf %351, %353 : vector<2x128xf32>
    %355 = vector.extract_strided_slice %354 {offsets = [0, 0], sizes = [2, 32], strides = [1, 1]} : vector<2x128xf32> to vector<2x32xf32>
    %356 = arith.negf %355 : vector<2x32xf32>
    %357 = math.exp %356 : vector<2x32xf32>
    %cst_104 = arith.constant 1.000000e+00 : f32
    %358 = vector.broadcast %cst_104 : f32 to vector<2x32xf32>
    %359 = arith.addf %358, %357 : vector<2x32xf32>
    %360 = arith.divf %358, %359 : vector<2x32xf32>
    %361 = vector.extract_strided_slice %354 {offsets = [0, 32], sizes = [2, 32], strides = [1, 1]} : vector<2x128xf32> to vector<2x32xf32>
    %362 = arith.negf %361 : vector<2x32xf32>
    %363 = math.exp %362 : vector<2x32xf32>
    %cst_105 = arith.constant 1.000000e+00 : f32
    %364 = vector.broadcast %cst_105 : f32 to vector<2x32xf32>
    %365 = arith.addf %364, %363 : vector<2x32xf32>
    %366 = arith.divf %364, %365 : vector<2x32xf32>
    %367 = vector.extract_strided_slice %354 {offsets = [0, 64], sizes = [2, 32], strides = [1, 1]} : vector<2x128xf32> to vector<2x32xf32>
    %368 = math.tanh %367 : vector<2x32xf32>
    %369 = vector.extract_strided_slice %354 {offsets = [0, 96], sizes = [2, 32], strides = [1, 1]} : vector<2x128xf32> to vector<2x32xf32>
    %370 = arith.negf %369 : vector<2x32xf32>
    %371 = math.exp %370 : vector<2x32xf32>
    %cst_106 = arith.constant 1.000000e+00 : f32
    %372 = vector.broadcast %cst_106 : f32 to vector<2x32xf32>
    %373 = arith.addf %372, %371 : vector<2x32xf32>
    %374 = arith.divf %372, %373 : vector<2x32xf32>
    %375 = arith.mulf %366, %340 : vector<2x32xf32>
    %376 = arith.mulf %360, %368 : vector<2x32xf32>
    %377 = arith.addf %375, %376 : vector<2x32xf32>
    %378 = math.tanh %377 : vector<2x32xf32>
    %379 = arith.mulf %374, %378 : vector<2x32xf32>
    %380 = arith.index_cast %348 : i32 to index
    %c0_107 = arith.constant 0 : index
    %c0_108 = arith.constant 0 : index
    %381 = vector.load %arg3[%380, %c0_107, %c0_108] : memref<8x2x1xf32, #tpu.memory_space<vmem>>, vector<1x2x1xf32>
    %382 = vector.shape_cast %381 : vector<1x2x1xf32> to vector<2x1xf32>
    %383 = vector.broadcast %382 : vector<2x1xf32> to vector<2x32xf32>
    %384 = arith.mulf %383, %379 : vector<2x32xf32>
    %cst_109 = arith.constant 1.000000e+00 : f32
    %385 = vector.broadcast %cst_109 : f32 to vector<2x1xf32>
    %386 = arith.subf %385, %382 : vector<2x1xf32>
    %387 = vector.broadcast %386 : vector<2x1xf32> to vector<2x32xf32>
    %388 = arith.mulf %387, %333 : vector<2x32xf32>
    %389 = arith.addf %384, %388 : vector<2x32xf32>
    %390 = vector.broadcast %382 : vector<2x1xf32> to vector<2x32xf32>
    %391 = arith.mulf %390, %377 : vector<2x32xf32>
    %cst_110 = arith.constant 1.000000e+00 : f32
    %392 = vector.broadcast %cst_110 : f32 to vector<2x1xf32>
    %393 = arith.subf %392, %382 : vector<2x1xf32>
    %394 = vector.broadcast %393 : vector<2x1xf32> to vector<2x32xf32>
    %395 = arith.mulf %394, %340 : vector<2x32xf32>
    %396 = arith.addf %391, %395 : vector<2x32xf32>
    %397 = vector.broadcast %382 : vector<2x1xf32> to vector<2x32xf32>
    %398 = arith.mulf %397, %379 : vector<2x32xf32>
    %c0_111 = arith.constant 0 : index
    %399 = arith.index_cast %348 : i32 to index
    %c0_112 = arith.constant 0 : index
    %c0_113 = arith.constant 0 : index
    %400 = vector.load %arg5[%c0_111, %399, %c0_112, %c0_113] : memref<1x8x2x32xf32, #tpu.memory_space<vmem>>, vector<1x1x2x32xf32>
    %401 = vector.shape_cast %400 : vector<1x1x2x32xf32> to vector<2x32xf32>
    %402 = vector.shape_cast %398 : vector<2x32xf32> to vector<1x1x2x32xf32>
    tpu.vector_store %arg5[%c0_111, %399, %c0_112, %c0_113], %402 {strides = array<i32>} : memref<1x8x2x32xf32, #tpu.memory_space<vmem>>, vector<1x1x2x32xf32>,
    %c7_i32_114 = arith.constant 7 : i32
    %c7_i32_115 = arith.constant 7 : i32
    %403 = arith.subi %c7_i32_115, %c7_i32_114 : i32
    %404 = arith.select %0, %403, %c7_i32_114 : i32
    %c0_116 = arith.constant 0 : index
    %405 = arith.index_cast %404 : i32 to index
    %c0_117 = arith.constant 0 : index
    %c0_118 = arith.constant 0 : index
    %406 = vector.load %arg2[%c0_116, %405, %c0_117, %c0_118] : memref<1x8x2x128xf32, #tpu.memory_space<vmem>>, vector<1x1x2x128xf32>
    %407 = vector.shape_cast %406 : vector<1x1x2x128xf32> to vector<2x128xf32>
    %408 = arith.truncf %389 : vector<2x32xf32> to vector<2x32xbf16>
    %cst_119 = arith.constant dense<0.000000e+00> : vector<2x128xf32>
    %409 = tpu.matmul %408, %6, %cst_119 {dimension_numbers = #tpu.dot_dimension_numbers<[1], [0], [0], [1], [0, 0, 1, 1], [], []>} : vector<2x32xbf16>, vector<32x128xbf16>, vector<2x128xf32> -> vector<2x128xf32>
    %410 = arith.addf %407, %409 : vector<2x128xf32>
    %411 = vector.extract_strided_slice %410 {offsets = [0, 0], sizes = [2, 32], strides = [1, 1]} : vector<2x128xf32> to vector<2x32xf32>
    %412 = arith.negf %411 : vector<2x32xf32>
    %413 = math.exp %412 : vector<2x32xf32>
    %cst_120 = arith.constant 1.000000e+00 : f32
    %414 = vector.broadcast %cst_120 : f32 to vector<2x32xf32>
    %415 = arith.addf %414, %413 : vector<2x32xf32>
    %416 = arith.divf %414, %415 : vector<2x32xf32>
    %417 = vector.extract_strided_slice %410 {offsets = [0, 32], sizes = [2, 32], strides = [1, 1]} : vector<2x128xf32> to vector<2x32xf32>
    %418 = arith.negf %417 : vector<2x32xf32>
    %419 = math.exp %418 : vector<2x32xf32>
    %cst_121 = arith.constant 1.000000e+00 : f32
    %420 = vector.broadcast %cst_121 : f32 to vector<2x32xf32>
    %421 = arith.addf %420, %419 : vector<2x32xf32>
    %422 = arith.divf %420, %421 : vector<2x32xf32>
    %423 = vector.extract_strided_slice %410 {offsets = [0, 64], sizes = [2, 32], strides = [1, 1]} : vector<2x128xf32> to vector<2x32xf32>
    %424 = math.tanh %423 : vector<2x32xf32>
    %425 = vector.extract_strided_slice %410 {offsets = [0, 96], sizes = [2, 32], strides = [1, 1]} : vector<2x128xf32> to vector<2x32xf32>
    %426 = arith.negf %425 : vector<2x32xf32>
    %427 = math.exp %426 : vector<2x32xf32>
    %cst_122 = arith.constant 1.000000e+00 : f32
    %428 = vector.broadcast %cst_122 : f32 to vector<2x32xf32>
    %429 = arith.addf %428, %427 : vector<2x32xf32>
    %430 = arith.divf %428, %429 : vector<2x32xf32>
    %431 = arith.mulf %422, %396 : vector<2x32xf32>
    %432 = arith.mulf %416, %424 : vector<2x32xf32>
    %433 = arith.addf %431, %432 : vector<2x32xf32>
    %434 = math.tanh %433 : vector<2x32xf32>
    %435 = arith.mulf %430, %434 : vector<2x32xf32>
    %436 = arith.index_cast %404 : i32 to index
    %c0_123 = arith.constant 0 : index
    %c0_124 = arith.constant 0 : index
    %437 = vector.load %arg3[%436, %c0_123, %c0_124] : memref<8x2x1xf32, #tpu.memory_space<vmem>>, vector<1x2x1xf32>
    %438 = vector.shape_cast %437 : vector<1x2x1xf32> to vector<2x1xf32>
    %439 = vector.broadcast %438 : vector<2x1xf32> to vector<2x32xf32>
    %440 = arith.mulf %439, %435 : vector<2x32xf32>
    %cst_125 = arith.constant 1.000000e+00 : f32
    %441 = vector.broadcast %cst_125 : f32 to vector<2x1xf32>
    %442 = arith.subf %441, %438 : vector<2x1xf32>
    %443 = vector.broadcast %442 : vector<2x1xf32> to vector<2x32xf32>
    %444 = arith.mulf %443, %389 : vector<2x32xf32>
    %445 = arith.addf %440, %444 : vector<2x32xf32>
    %446 = vector.broadcast %438 : vector<2x1xf32> to vector<2x32xf32>
    %447 = arith.mulf %446, %433 : vector<2x32xf32>
    %cst_126 = arith.constant 1.000000e+00 : f32
    %448 = vector.broadcast %cst_126 : f32 to vector<2x1xf32>
    %449 = arith.subf %448, %438 : vector<2x1xf32>
    %450 = vector.broadcast %449 : vector<2x1xf32> to vector<2x32xf32>
    %451 = arith.mulf %450, %396 : vector<2x32xf32>
    %452 = arith.addf %447, %451 : vector<2x32xf32>
    %453 = vector.broadcast %438 : vector<2x1xf32> to vector<2x32xf32>
    %454 = arith.mulf %453, %435 : vector<2x32xf32>
    %c0_127 = arith.constant 0 : index
    %455 = arith.index_cast %404 : i32 to index
    %c0_128 = arith.constant 0 : index
    %c0_129 = arith.constant 0 : index
    %456 = vector.load %arg5[%c0_127, %455, %c0_128, %c0_129] : memref<1x8x2x32xf32, #tpu.memory_space<vmem>>, vector<1x1x2x32xf32>
    %457 = vector.shape_cast %456 : vector<1x1x2x32xf32> to vector<2x32xf32>
    %458 = vector.shape_cast %454 : vector<2x32xf32> to vector<1x1x2x32xf32>
    tpu.vector_store %arg5[%c0_127, %455, %c0_128, %c0_129], %458 {strides = array<i32>} : memref<1x8x2x32xf32, #tpu.memory_space<vmem>>, vector<1x1x2x32xf32>,
    %c8_i32 = arith.constant 8 : i32
    %c0_130 = arith.constant 0 : index
    %c0_131 = arith.constant 0 : index
    %c0_132 = arith.constant 0 : index
    %459 = vector.load %arg6[%c0_130, %c0_131, %c0_132] : memref<1x2x32xf32, #tpu.memory_space<vmem>>, vector<1x2x32xf32>
    %460 = vector.shape_cast %459 : vector<1x2x32xf32> to vector<2x32xf32>
    %461 = vector.shape_cast %445 : vector<2x32xf32> to vector<1x2x32xf32>
    tpu.vector_store %arg6[%c0_130, %c0_131, %c0_132], %461 {strides = array<i32>} : memref<1x2x32xf32, #tpu.memory_space<vmem>>, vector<1x2x32xf32>,
    %c0_133 = arith.constant 0 : index
    %c0_134 = arith.constant 0 : index
    %c0_135 = arith.constant 0 : index
    %462 = vector.load %arg7[%c0_133, %c0_134, %c0_135] : memref<1x2x32xf32, #tpu.memory_space<vmem>>, vector<1x2x32xf32>
    %463 = vector.shape_cast %462 : vector<1x2x32xf32> to vector<2x32xf32>
    %464 = vector.shape_cast %452 : vector<2x32xf32> to vector<1x2x32xf32>
    tpu.vector_store %arg7[%c0_133, %c0_134, %c0_135], %464 {strides = array<i32>} : memref<1x2x32xf32, #tpu.memory_space<vmem>>, vector<1x2x32xf32>,
    return
  }
  func.func @transform_0(%arg0: i32, %arg1: i32) -> (i32, i32, i32, i32) {
    %c2_i32 = arith.constant 2 : i32
    %0 = arith.muli %c2_i32, %arg1 : i32
    %c0_i32 = arith.constant 0 : i32
    %1 = arith.subi %c0_i32, %0 : i32
    %2 = arith.muli %arg0, %1 : i32
    %3 = arith.addi %arg1, %2 : i32
    %c0_i32_0 = arith.constant 0 : i32
    %c0_i32_1 = arith.constant 0 : i32
    %c0_i32_2 = arith.constant 0 : i32
    return %arg0, %3, %c0_i32_0, %c0_i32_1 : i32, i32, i32, i32
  }
  func.func @transform_1(%arg0: i32, %arg1: i32) -> (i32, i32, i32) {
    %c2_i32 = arith.constant 2 : i32
    %0 = arith.muli %c2_i32, %arg1 : i32
    %c0_i32 = arith.constant 0 : i32
    %1 = arith.subi %c0_i32, %0 : i32
    %2 = arith.muli %arg0, %1 : i32
    %3 = arith.addi %arg1, %2 : i32
    %c0_i32_0 = arith.constant 0 : i32
    %c0_i32_1 = arith.constant 0 : i32
    %c0_i32_2 = arith.constant 0 : i32
    return %3, %c0_i32_0, %c0_i32_1 : i32, i32, i32
  }
  func.func @transform_2(%arg0: i32, %arg1: i32) -> (i32, i32, i32) {
    %c0_i32 = arith.constant 0 : i32
    %c0_i32_0 = arith.constant 0 : i32
    %c0_i32_1 = arith.constant 0 : i32
    return %arg0, %c0_i32, %c0_i32_0 : i32, i32, i32
  }
  func.func @transform_3(%arg0: i32, %arg1: i32) -> (i32, i32, i32, i32) {
    %c2_i32 = arith.constant 2 : i32
    %0 = arith.muli %c2_i32, %arg1 : i32
    %c0_i32 = arith.constant 0 : i32
    %1 = arith.subi %c0_i32, %0 : i32
    %2 = arith.muli %arg0, %1 : i32
    %3 = arith.addi %arg1, %2 : i32
    %c0_i32_0 = arith.constant 0 : i32
    %c0_i32_1 = arith.constant 0 : i32
    %c0_i32_2 = arith.constant 0 : i32
    return %arg0, %3, %c0_i32_0, %c0_i32_1 : i32, i32, i32, i32
  }
  func.func @transform_4(%arg0: i32, %arg1: i32) -> (i32, i32, i32) {
    %c0_i32 = arith.constant 0 : i32
    %c0_i32_0 = arith.constant 0 : i32
    %c0_i32_1 = arith.constant 0 : i32
    return %arg0, %c0_i32, %c0_i32_0 : i32, i32, i32
  }
  func.func @transform_5(%arg0: i32, %arg1: i32) -> (i32, i32, i32) {
    %c0_i32 = arith.constant 0 : i32
    %c0_i32_0 = arith.constant 0 : i32
    %c0_i32_1 = arith.constant 0 : i32
    return %arg0, %c0_i32, %c0_i32_0 : i32, i32, i32
  }
}

</mosaic_0001>

<bundles_post_ra>
// kernel: _lambda_.2
= control target key start
LH: loop header
LB: loop body
LE: loop exit
PB: predicated region body
PF: predicated region fallthrough
CT: control target
= control target key end

     0   :  { %s1769_s18 = smov 0   ;;  %s1771_s19 = smov 0   ;;  %s2077_s0 = inlined_call_operand.vmem [shape: f32[2,8,2,128], index: 0, kind: input, shape index: {}]   ;;  %s2078_s1 = inlined_call_operand.vmem [shape: f32[8,2,1], index: 1, kind: input, shape index: {}]   ;;  %s2079_s2 = inlined_call_operand.vmem [shape: f32[2,32,128], index: 2, kind: input, shape index: {}]   ;;  %s2080_s3 = inlined_call_operand.vmem [shape: f32[2,8,2,32], index: 3, kind: output, shape index: {0}]   ;;  %s2081_s4 = inlined_call_operand.vmem [shape: f32[2,2,32], index: 4, kind: output, shape index: {1}]   ;;  %s2082_s5 = inlined_call_operand.vmem [shape: f32[2,2,32], index: 5, kind: output, shape index: {2}]  }
   0x1   :  { %s1773_s20 = smov 0  }
   0x2 LB: > { %s28_s21 = sadd.s32 1, %s1727_s19  ;;  %p1487_p0 = scmp.ge.s32.totalorder %s1731_s20, 1  ;;  %s1731_s20 = sphi %s1773_s20, %s16_s20   ;;  %s1727_s19 = sphi %s1771_s19, %s2084_s19   ;;  %s1723_s18 = sphi %s1769_s18, %s2083_s18  }
   0x3   : > { %p30_p1 = scmp.ge.s32.totalorder %s28_s21, 2  ;;  %p274_p2 = scmp.lt.s32.totalorder %s1731_s20, 3 }
   0x5   : > { %s2086_s21 = smov (%p30_p1, %s28_s21), 0  ;;  %p275_p3 = pnand %p1487_p0, %p274_p2 }
   0x6   : > { %p345_p4 = scmp.lt.s32.totalorder (!%p275_p3), %s1723_s18, 1  ;;  %p404_p5 = scmp.eq.s32.totalorder (!%p275_p3), %s1723_s18, 1 }
   0x7   : > { %278 = sbr.rel (%p275_p3) target bundleno = 5587 (0x15d3), region = 32  ;;  %s1736_s16 = smov (!%p275_p3), 64  }
   0x8   : > { %s1737_s25 = smov (!%p275_p3), 32   ;;  %s1738_s26 = smov (!%p275_p3), 96  }
   0xc   : > { %v1733_v0 = vmov 0.0   ;;  %vm1734_vm0 = vmmov 0   ;;  %s1794_s22 = scalar_select %p345_p4, %s1723_s18, 1  ;;  %vm409_vm1 = vcmask 254976   ;;  %vm425_vm2 = vcmask 261120  }
   0xd   : > { %1549 = vmatprep.subr.bf16.mxu0 %v1733_v0  ;;  %1553 = vmatprep.mubr.msk.bf16.mxu0 %vm1734_vm0, %v1733_v0  ;;  %v1735_v9 = vmov 0   ;;  %s420_s9 = scalar_select %p404_p5, 7, 0 }
   0xe   : > { %1557 = vmatprep.subr.bf16.mxu1 %v1733_v0  ;;  %1561 = vmatprep.mubr.msk.bf16.mxu1 %vm1734_vm0, %v1733_v0  ;;  %s1523_s23 = sshll.u32 %s1794_s22, 5  ;;  %s1494_s24 = sshll.u32 %s1794_s22, 1 }
   0xf   : > { %s376_s27 = scalar_lea.vmem %s2079_s2, %s1523_s23  ;;  %s1807_s30 = scalar_lea.vmem %s2081_s4, %s1494_s24  ;;  %1644 = vset.pattern.permute.xlu0 %v1735_v9  ;;  %1643 = vset.pattern.permute.xlu1 %v1735_v9 }
  0x10   : > { %v414_v1 = vld [vmem:[%s376_s27 + $0x10] sm:$0xff]  ;;  %v415_v2 = vld [vmem:[%s376_s27 + $0x18] sm:$0xff]  ;;  %v412_v3 = vld [vmem:[%s376_s27] sm:$0xff]  ;;  %410 = vst.msk [vmem:[%s1807_s30] sm:$0x3] %vm409_vm1, %v1733_v0  ;;  %s1835_s8 = scalar_lea.vmem %s2082_s5, %s1494_s24  ;;  %s1522_s10 = sshll.u32 %s1794_s22, 4 }
  0x11   : > { %v1812_v4 = vpack.c.bf16 %v415_v2, %v414_v1  ;;  %v413_v5 = vld [vmem:[%s376_s27 + $0x8] sm:$0xff]  ;;  %411 = vst.msk [vmem:[%s1835_s8] sm:$0x3] %vm409_vm1, %v1733_v0  ;;  %s1849_s13 = scalar_lea.vmem %s2077_s0, %s1522_s10  ;;  %s1851_s14 = sshll.u32 %s420_s9, 1 }
  0x12   : > { %v1815_v6 = vpack.c.bf16 %v413_v5, %v412_v3  ;;  %s422_s15 = scalar_lea.vmem %s1849_s13, %s1851_s14  ;;  %s498_s24 = scalar_lea.vmem %s2078_s1, %s1851_s14 }
  0x13   : > { %1550 = vmatpush3.bf16.msra.mxu0 %v1812_v4  ;;  %1558 = vmatpush3.bf16.msra.mxu1 %v1812_v4  ;;  %v423_v10 = vld [vmem:[%s422_s15] sm:$0x3]  ;;  %s532_s27 = scalar_select %p404_p5, 6, 1 }
  0x14   : > { %1551 = vmatprep.subr.bf16.mxu0 %v1733_v0  ;;  %1559 = vmatprep.subr.bf16.mxu1 %v1733_v0  ;;  %v499_v18 = vld [vmem:[%s498_s24] sm:$0x3]  ;;  %s633_s11 = scalar_select %p404_p5, 5, 2 }
  0x15   : > { %v506_v25 = vsub.f32 1.0, %v499_v18  ;;  %s1870_s28 = sshll.u32 %s532_s27, 1 }
  0x16   : > { %s608_s7 = scalar_lea.vmem %s2078_s1, %s1870_s28  ;;  %s534_s9 = scalar_lea.vmem %s1849_s13, %s1870_s28 }
  0x17   : > { %1552 = vmatpush3.bf16.msra.mxu0 %v1815_v6  ;;  %v418_v7 = vld [vmem:[%s1807_s30] sm:$0x3]  ;;  %1560 = vmatpush3.bf16.msra.mxu1 %v1815_v6  ;;  %s1903_s12 = sshll.u32 %s633_s11, 1 }
  0x18   : > { %v424_v8 = vpack.c.bf16 %v418_v7, %v418_v7  ;;  %1565 = vmatprep.subr.bf16.mxu0 %v1733_v0  ;;  %1573 = vmatprep.subr.bf16.mxu1 %v1733_v0  ;;  %v419_v17 = vld [vmem:[%s1835_s8] sm:$0x3]  ;;  %s635_s15 = scalar_lea.vmem %s1849_s13, %s1903_s12  ;;  %s709_s24 = scalar_lea.vmem %s2078_s1, %s1903_s12 }
  0x19   : > { %v609_v41 = vld [vmem:[%s608_s7] sm:$0x3]  ;;  %s734_s27 = scalar_select %p404_p5, 4, 3 }
  0x1a   : > { %1554 = vmatmul.mubr.msk.bf16.vlgmr.msra.gmra.mxu0 %vm425_vm2, %v424_v8  ;;  %v535_v43 = vld [vmem:[%s534_s9] sm:$0x3]  ;;  %v616_v56 = vsub.f32 1.0, %v609_v41  ;;  %s936_s7 = scalar_select %p404_p5, 2, 5 }
  0x1b   : > { %1566 = vmatpush3.bf16.msra.mxu0 %v1812_v4  ;;  %1569 = vmatprep.mubr.msk.bf16.mxu0 %vm1734_vm0, %v1733_v0  ;;  %s1927_s29 = sshll.u32 %s734_s27, 1 }
  0x1c   : > { %1567 = vmatprep.subr.bf16.mxu0 %v1733_v0  ;;  %s736_s6 = scalar_lea.vmem %s1849_s13, %s1927_s29  ;;  %s810_s11 = scalar_lea.vmem %s2078_s1, %s1927_s29 }
  0x1d   : > { %s1973_s9 = sshll.u32 %s936_s7, 1 }
  0x1e   : > { %s1037_s27 = scalar_select %p404_p5, 1, 6 }
  0x1f   : > { %1568 = vmatpush3.bf16.msra.mxu0 %v1815_v6 }
  0x20   : > { %1581 = vmatprep.subr.bf16.mxu0 %v1733_v0 }
  0xda   : > { %v463_v11 = vpop.f32.mrf.mxu0 }
  0xdb   : > { %v469_v12 = vadd.f32 %v463_v11, %v423_v10 }
  0xdc   : > { %v1555_v13 = vpop.f32.mrf.mxu0 }
  0xdd   : > { %1645 = vtanh.f32 %v469_v12  ;;  %v1498_v19 = vmul.f32 -1.442695, %v469_v12  ;;  %v636_v12 = vld [vmem:[%s635_s15] sm:$0x3]  ;;  %s835_s15 = scalar_select %p404_p5, 3, 4 }
  0xde   : > { %v466_v14 = vpop.f32.mrf.mxu0 }
  0xdf   : > { %1647 = vpow2.f32 %v1498_v19  ;;  %v710_v19 = vld [vmem:[%s709_s24] sm:$0x3]  ;;  %s1950_s17 = sshll.u32 %s835_s15, 1  ;;  %s1012_s24 = scalar_lea.vmem %s2078_s1, %s1973_s9 }
  0xe0   : > { %v1556_v15 = vpop.f32.mrf.mxu0  ;;  %s837_s23 = scalar_lea.vmem %s1849_s13, %s1950_s17 }
  0xea   : > { %v1646_v16 = vpop.eup %1645 }
  0xeb   : > { %483 = vrot.lane.b32.xlu0 %v1646_v16, %s1736_s16 }
  0xec   : > { %v1648_v20 = vpop.eup %1647 }
  0xed   : > { %v473_v21 = vadd.f32 1.0, %v1648_v20 }
  0xef   : > { %478 = vrot.lane.b32.xlu0 %v419_v17, %s1737_s25  ;;  %1649 = vrcp.f32 %v473_v21 }
  0xf3   : > { %502 = vperm.xlu0 %1644, %v499_v18  }
  0xfc   : > { %v1650_v22 = vpop.eup %1649 }
 0x15d   : > { %v484_v23 = vpop.permute.xlu0 %483 }
 0x15e   : > { %v486_v24 = vmul.f32 %v1650_v22, %v484_v23 }
 0x160   : > { %488 = vrot.lane.b32.xlu1 %v486_v24, %s1737_s25 }
 0x161   : > { %v479_v26 = vpop.permute.xlu0 %478 }
 0x162   : > { %v481_v27 = vmul.f32 %v1650_v22, %v479_v26  ;;  %v717_v26 = vsub.f32 1.0, %v710_v19 }
 0x164   : > { %509 = vperm.xlu1 %1643, %v506_v25  }
 0x16e   : > { %v503_v35 = vpop.permute.xlu0 %502 }
 0x1d2   : > { %v489_v28 = vpop.permute.xlu1 %488 }
 0x1d3   : > { %v491_v29 = vadd.f32 %v489_v28, %v481_v27 }
 0x1d5   : > { %1651 = vtanh.f32 %v491_v29  ;;  %v518_v58 = vmul.f32 %v503_v35, %v491_v29 }
 0x1df   : > { %v510_v30 = vpop.permute.xlu1 %509 }
 0x1e0   : > { %v512_v32 = vmul.f32 %v510_v30, %v418_v7  ;;  %v519_v40 = vmul.f32 %v510_v30, %v419_v17 }
 0x1e2   : > { %v1652_v31 = vpop.eup %1651 }
 0x1e3   : > { %494 = vrot.lane.b32.xlu1 %v1652_v31, %s1736_s16 }
 0x1e7   : > { %514 = vrot.lane.b32.xlu1 %v512_v32, %s1738_s26 }
 0x255   : > { %v495_v33 = vpop.permute.xlu1 %494 }
 0x256   : > { %v497_v34 = vmul.f32 %v1650_v22, %v495_v33 }
 0x258   : > { %v1865_v36 = vmul.f32 %v503_v35, %v497_v34 }
 0x259   : > { %v515_v37 = vpop.permute.xlu1 %514 }
 0x25a   : > { %v517_v38 = vadd.f32 %v515_v37, %v1865_v36 }
 0x25c   : > { %v536_v39 = vpack.c.bf16 %v517_v38, %v517_v38 }
 0x25e   : > { %538 = vrot.lane.b32.xlu0 %v536_v39, %s1737_s25 }
 0x262   : > { %521 = vrot.lane.b32.xlu0 %v519_v40, %s1737_s25 }
 0x266   : > { %612 = vperm.xlu0 %1644, %v609_v41  }
 0x2d0   : > { %v539_v42 = vpop.permute.xlu0 %538 }
 0x2d1   : > { %1562 = vmatmul.mubr.msk.bf16.vlgmr.msra.gmra.mxu1 %vm425_vm2, %v539_v42 }
 0x2d2   : > { %1574 = vmatpush3.bf16.msra.mxu1 %v1812_v4  ;;  %1577 = vmatprep.mubr.msk.bf16.mxu1 %vm1734_vm0, %v1733_v0 }
 0x2d3   : > { %1575 = vmatprep.subr.bf16.mxu1 %v1733_v0 }
 0x2d4   : > { %v522_v57 = vpop.permute.xlu0 %521 }
 0x2d5   : > { %v524_v59 = vadd.f32 %v522_v57, %v518_v58 }
 0x2d6   : > { %1576 = vmatpush3.bf16.msra.mxu1 %v1815_v6 }
 0x2d7   : > { %1589 = vmatprep.subr.bf16.mxu1 %v1733_v0 }
 0x2e1   : > { %v613_v1 = vpop.permute.xlu0 %612 }
 0x391   : > { %v577_v44 = vpop.f32.mrf.mxu1 }
 0x392   : > { %v583_v45 = vadd.f32 %v577_v44, %v535_v43  ;;  %v737_v44 = vld [vmem:[%s736_s6] sm:$0x3]  ;;  %s911_s6 = scalar_lea.vmem %s2078_s1, %s1950_s17 }
 0x393   : > { %v1563_v46 = vpop.f32.mrf.mxu1 }
 0x394   : > { %1653 = vtanh.f32 %v583_v45  ;;  %v1501_v50 = vmul.f32 -1.442695, %v583_v45 }
 0x395   : > { %v580_v47 = vpop.f32.mrf.mxu1 }
 0x396   : > { %1655 = vpow2.f32 %v1501_v50 }
 0x397   : > { %v1564_v48 = vpop.f32.mrf.mxu1 }
 0x3a1   : > { %v1654_v49 = vpop.eup %1653 }
 0x3a2   : > { %593 = vrot.lane.b32.xlu1 %v1654_v49, %s1736_s16 }
 0x3a3   : > { %v1656_v51 = vpop.eup %1655 }
 0x3a4   : > { %v587_v52 = vadd.f32 1.0, %v1656_v51  ;;  %v811_v51 = vld [vmem:[%s810_s11] sm:$0x3]  ;;  %s938_s11 = scalar_lea.vmem %s1849_s13, %s1973_s9 }
 0x3a5   : > { %v818_v58 = vsub.f32 1.0, %v811_v51 }
 0x3a6   : > { %1657 = vrcp.f32 %v587_v52 }
 0x3b3   : > { %v1658_v53 = vpop.eup %1657 }
 0x3b4   : > { %v591_v60 = vmul.f32 %v1658_v53, %v524_v59 }
 0x414   : > { %v594_v54 = vpop.permute.xlu1 %593 }
 0x415   : > { %v596_v55 = vmul.f32 %v1658_v53, %v594_v54 }
 0x417   : > { %598 = vrot.lane.b32.xlu1 %v596_v55, %s1737_s25 }
 0x41b   : > { %619 = vperm.xlu1 %1643, %v616_v56  }
 0x489   : > { %v599_v61 = vpop.permute.xlu1 %598 }
 0x48a   : > { %v601_v62 = vadd.f32 %v599_v61, %v591_v60 }
 0x48c   : > { %1659 = vtanh.f32 %v601_v62  ;;  %v624_v28 = vmul.f32 %v613_v1, %v601_v62 }
 0x496   : > { %v620_v2 = vpop.permute.xlu1 %619 }
 0x497   : > { %v622_v7 = vmul.f32 %v620_v2, %v517_v38  ;;  %v625_v27 = vmul.f32 %v620_v2, %v524_v59 }
 0x499   : > { %v1660_v63 = vpop.eup %1659  ;;  %v626_v29 = vadd.f32 %v625_v27, %v624_v28 }
 0x49a   : > { %604 = vrot.lane.b32.xlu0 %v1660_v63, %s1736_s16 }
 0x50c   : > { %v605_v3 = vpop.permute.xlu0 %604 }
 0x50d   : > { %v607_v5 = vmul.f32 %v1658_v53, %v605_v3 }
 0x50f   : > { %v1890_v8 = vmul.f32 %v613_v1, %v607_v5 }
 0x511   : > { %v623_v9 = vadd.f32 %v622_v7, %v1890_v8 }
 0x513   : > { %v637_v10 = vpack.c.bf16 %v623_v9, %v623_v9 }
 0x515   : > { %639 = vrot.lane.b32.xlu1 %v637_v10, %s1737_s25 }
 0x587   : > { %v640_v11 = vpop.permute.xlu1 %639 }
 0x588   : > { %1570 = vmatmul.mubr.msk.bf16.vlgmr.msra.gmra.mxu0 %vm425_vm2, %v640_v11 }
 0x589   : > { %1582 = vmatpush3.bf16.msra.mxu0 %v1812_v4  ;;  %1585 = vmatprep.mubr.msk.bf16.mxu0 %vm1734_vm0, %v1733_v0 }
 0x58a   : > { %1583 = vmatprep.subr.bf16.mxu0 %v1733_v0 }
 0x58d   : > { %1584 = vmatpush3.bf16.msra.mxu0 %v1815_v6 }
 0x58e   : > { %1597 = vmatprep.subr.bf16.mxu0 %v1733_v0 }
 0x648   : > { %v678_v13 = vpop.f32.mrf.mxu0 }
 0x649   : > { %v684_v14 = vadd.f32 %v678_v13, %v636_v12 }
 0x64a   : > { %v1571_v15 = vpop.f32.mrf.mxu0 }
 0x64b   : > { %1661 = vtanh.f32 %v684_v14  ;;  %v1504_v20 = vmul.f32 -1.442695, %v684_v14  ;;  %v838_v15 = vld [vmem:[%s837_s23] sm:$0x3] }
 0x64c   : > { %v681_v16 = vpop.f32.mrf.mxu0 }
 0x64d   : > { %1663 = vpow2.f32 %v1504_v20 }
 0x64e   : > { %v1572_v17 = vpop.f32.mrf.mxu0 }
 0x658   : > { %v1662_v18 = vpop.eup %1661 }
 0x659   : > { %694 = vrot.lane.b32.xlu0 %v1662_v18, %s1736_s16 }
 0x65a   : > { %v1664_v21 = vpop.eup %1663 }
 0x65b   : > { %v688_v22 = vadd.f32 1.0, %v1664_v21 }
 0x65d   : > { %713 = vperm.xlu0 %1644, %v710_v19   ;;  %1665 = vrcp.f32 %v688_v22  ;;  %v912_v22 = vld [vmem:[%s911_s6] sm:$0x3]  ;;  %s1991_s6 = sshll.u32 %s1037_s27, 1 }
 0x65e   : > { %s1039_s7 = scalar_lea.vmem %s1849_s13, %s1991_s6  ;;  %s1113_s23 = scalar_lea.vmem %s2078_s1, %s1991_s6 }
 0x66a   : > { %v1666_v23 = vpop.eup %1665 }
 0x66b   : > { %v692_v30 = vmul.f32 %v1666_v23, %v626_v29 }
 0x6cb   : > { %v695_v24 = vpop.permute.xlu0 %694 }
 0x6cc   : > { %v697_v25 = vmul.f32 %v1666_v23, %v695_v24 }
 0x6ce   : > { %699 = vrot.lane.b32.xlu1 %v697_v25, %s1737_s25 }
 0x6d2   : > { %720 = vperm.xlu1 %1643, %v717_v26  }
 0x6d8   : > { %v714_v34 = vpop.permute.xlu0 %713 }
 0x740   : > { %v700_v31 = vpop.permute.xlu1 %699 }
 0x741   : > { %v702_v32 = vadd.f32 %v700_v31, %v692_v30 }
 0x743   : > { %1667 = vtanh.f32 %v702_v32  ;;  %v725_v60 = vmul.f32 %v714_v34, %v702_v32 }
 0x74d   : > { %v721_v35 = vpop.permute.xlu1 %720 }
 0x74e   : > { %v723_v39 = vmul.f32 %v721_v35, %v623_v9  ;;  %v726_v59 = vmul.f32 %v721_v35, %v626_v29  ;;  %v919_v29 = vsub.f32 1.0, %v912_v22 }
 0x750   : > { %v1668_v33 = vpop.eup %1667  ;;  %v727_v61 = vadd.f32 %v726_v59, %v725_v60 }
 0x751   : > { %705 = vrot.lane.b32.xlu0 %v1668_v33, %s1736_s16 }
 0x7c3   : > { %v706_v37 = vpop.permute.xlu0 %705 }
 0x7c4   : > { %v708_v38 = vmul.f32 %v1666_v23, %v706_v37 }
 0x7c6   : > { %v1914_v40 = vmul.f32 %v714_v34, %v708_v38 }
 0x7c8   : > { %v724_v41 = vadd.f32 %v723_v39, %v1914_v40 }
 0x7ca   : > { %v738_v42 = vpack.c.bf16 %v724_v41, %v724_v41 }
 0x7cc   : > { %740 = vrot.lane.b32.xlu1 %v738_v42, %s1737_s25 }
 0x83e   : > { %v741_v43 = vpop.permute.xlu1 %740 }
 0x83f   : > { %1578 = vmatmul.mubr.msk.bf16.vlgmr.msra.gmra.mxu1 %vm425_vm2, %v741_v43 }
 0x840   : > { %1590 = vmatpush3.bf16.msra.mxu1 %v1812_v4  ;;  %1593 = vmatprep.mubr.msk.bf16.mxu1 %vm1734_vm0, %v1733_v0 }
 0x841   : > { %1591 = vmatprep.subr.bf16.mxu1 %v1733_v0 }
 0x844   : > { %1592 = vmatpush3.bf16.msra.mxu1 %v1815_v6 }
 0x845   : > { %1605 = vmatprep.subr.bf16.mxu1 %v1733_v0 }
 0x8ff   : > { %v779_v45 = vpop.f32.mrf.mxu1 }
 0x900   : > { %v785_v46 = vadd.f32 %v779_v45, %v737_v44 }
 0x901   : > { %v1579_v47 = vpop.f32.mrf.mxu1 }
 0x902   : > { %1669 = vtanh.f32 %v785_v46  ;;  %v1507_v52 = vmul.f32 -1.442695, %v785_v46 }
 0x903   : > { %v782_v48 = vpop.f32.mrf.mxu1 }
 0x904   : > { %1671 = vpow2.f32 %v1507_v52  ;;  %v939_v48 = vld [vmem:[%s938_s11] sm:$0x3] }
 0x905   : > { %v1580_v49 = vpop.f32.mrf.mxu1 }
 0x90f   : > { %v1670_v50 = vpop.eup %1669 }
 0x910   : > { %795 = vrot.lane.b32.xlu0 %v1670_v50, %s1736_s16 }
 0x911   : > { %v1672_v53 = vpop.eup %1671 }
 0x912   : > { %v789_v54 = vadd.f32 1.0, %v1672_v53 }
 0x914   : > { %814 = vperm.xlu0 %1644, %v811_v51   ;;  %1673 = vrcp.f32 %v789_v54 }
 0x921   : > { %v1674_v55 = vpop.eup %1673 }
 0x922   : > { %v793_v62 = vmul.f32 %v1674_v55, %v727_v61 }
 0x982   : > { %v796_v56 = vpop.permute.xlu0 %795 }
 0x983   : > { %v798_v57 = vmul.f32 %v1674_v55, %v796_v56 }
 0x985   : > { %800 = vrot.lane.b32.xlu1 %v798_v57, %s1737_s25 }
 0x989   : > { %821 = vperm.xlu1 %1643, %v818_v58  }
 0x98f   : > { %v815_v3 = vpop.permute.xlu0 %814 }
 0x9f7   : > { %v801_v63 = vpop.permute.xlu1 %800 }
 0x9f8   : > { %v803_v1 = vadd.f32 %v801_v63, %v793_v62 }
 0x9fa   : > { %1675 = vtanh.f32 %v803_v1  ;;  %v826_v31 = vmul.f32 %v815_v3, %v803_v1 }
 0xa04   : > { %v822_v5 = vpop.permute.xlu1 %821 }
 0xa05   : > { %v824_v10 = vmul.f32 %v822_v5, %v724_v41  ;;  %v827_v30 = vmul.f32 %v822_v5, %v727_v61 }
 0xa07   : > { %v1676_v2 = vpop.eup %1675  ;;  %v828_v32 = vadd.f32 %v827_v30, %v826_v31 }
 0xa08   : > { %806 = vrot.lane.b32.xlu0 %v1676_v2, %s1736_s16 }
 0xa7a   : > { %v807_v7 = vpop.permute.xlu0 %806 }
 0xa7b   : > { %v809_v9 = vmul.f32 %v1674_v55, %v807_v7 }
 0xa7d   : > { %v1938_v11 = vmul.f32 %v815_v3, %v809_v9 }
 0xa7f   : > { %v825_v12 = vadd.f32 %v824_v10, %v1938_v11 }
 0xa81   : > { %v839_v13 = vpack.c.bf16 %v825_v12, %v825_v12 }
 0xa83   : > { %841 = vrot.lane.b32.xlu1 %v839_v13, %s1737_s25 }
 0xaf5   : > { %v842_v14 = vpop.permute.xlu1 %841 }
 0xaf6   : > { %1586 = vmatmul.mubr.msk.bf16.vlgmr.msra.gmra.mxu0 %vm425_vm2, %v842_v14 }
 0xaf7   : > { %1598 = vmatpush3.bf16.msra.mxu0 %v1812_v4  ;;  %1601 = vmatprep.mubr.msk.bf16.mxu0 %vm1734_vm0, %v1733_v0 }
 0xaf8   : > { %1599 = vmatprep.subr.bf16.mxu0 %v1733_v0 }
 0xafb   : > { %1600 = vmatpush3.bf16.msra.mxu0 %v1815_v6 }
 0xbb6   : > { %v880_v16 = vpop.f32.mrf.mxu0 }
 0xbb7   : > { %v886_v17 = vadd.f32 %v880_v16, %v838_v15 }
 0xbb8   : > { %v1587_v18 = vpop.f32.mrf.mxu0 }
 0xbb9   : > { %1677 = vtanh.f32 %v886_v17  ;;  %v1510_v23 = vmul.f32 -1.442695, %v886_v17  ;;  %v1040_v17 = vld [vmem:[%s1039_s7] sm:$0x3] }
 0xbba   : > { %v883_v19 = vpop.f32.mrf.mxu0 }
 0xbbb   : > { %1679 = vpow2.f32 %v1510_v23 }
 0xbbc   : > { %v1588_v20 = vpop.f32.mrf.mxu0 }
 0xbc6   : > { %v1678_v21 = vpop.eup %1677 }
 0xbc7   : > { %896 = vrot.lane.b32.xlu0 %v1678_v21, %s1736_s16 }
 0xbc8   : > { %v1680_v24 = vpop.eup %1679 }
 0xbc9   : > { %v890_v25 = vadd.f32 1.0, %v1680_v24  ;;  %v1114_v24 = vld [vmem:[%s1113_s23] sm:$0x3] }
 0xbca   : > { %v1121_v31 = vsub.f32 1.0, %v1114_v24 }
 0xbcb   : > { %915 = vperm.xlu0 %1644, %v912_v22   ;;  %1681 = vrcp.f32 %v890_v25 }
 0xbd8   : > { %v1682_v26 = vpop.eup %1681 }
 0xbd9   : > { %v894_v33 = vmul.f32 %v1682_v26, %v828_v32 }
 0xc39   : > { %v897_v27 = vpop.permute.xlu0 %896 }
 0xc3a   : > { %v899_v28 = vmul.f32 %v1682_v26, %v897_v27 }
 0xc3c   : > { %901 = vrot.lane.b32.xlu1 %v899_v28, %s1737_s25 }
 0xc40   : > { %922 = vperm.xlu1 %1643, %v919_v29  }
 0xc46   : > { %v916_v38 = vpop.permute.xlu0 %915 }
 0xcae   : > { %v902_v34 = vpop.permute.xlu1 %901 }
 0xcaf   : > { %v904_v35 = vadd.f32 %v902_v34, %v894_v33 }
 0xcb1   : > { %1683 = vtanh.f32 %v904_v35  ;;  %v927_v61 = vmul.f32 %v916_v38, %v904_v35 }
 0xcbb   : > { %v923_v39 = vpop.permute.xlu1 %922 }
 0xcbc   : > { %v925_v43 = vmul.f32 %v923_v39, %v825_v12  ;;  %v928_v60 = vmul.f32 %v923_v39, %v828_v32 }
 0xcbe   : > { %v1684_v37 = vpop.eup %1683  ;;  %v929_v62 = vadd.f32 %v928_v60, %v927_v61 }
 0xcbf   : > { %907 = vrot.lane.b32.xlu0 %v1684_v37, %s1736_s16 }
 0xd31   : > { %v908_v41 = vpop.permute.xlu0 %907 }
 0xd32   : > { %v910_v42 = vmul.f32 %v1682_v26, %v908_v41 }
 0xd34   : > { %v1961_v44 = vmul.f32 %v916_v38, %v910_v42 }
 0xd36   : > { %v926_v45 = vadd.f32 %v925_v43, %v1961_v44 }
 0xd38   : > { %v940_v46 = vpack.c.bf16 %v926_v45, %v926_v45 }
 0xd3a   : > { %942 = vrot.lane.b32.xlu1 %v940_v46, %s1737_s25 }
 0xdac   : > { %v943_v47 = vpop.permute.xlu1 %942 }
 0xdad   : > { %1594 = vmatmul.mubr.msk.bf16.vlgmr.msra.gmra.mxu1 %vm425_vm2, %v943_v47 }
 0xdae   : > { %1606 = vmatpush3.bf16.msra.mxu1 %v1812_v4  ;;  %1609 = vmatprep.mubr.msk.bf16.mxu1 %vm1734_vm0, %v1733_v0 }
 0xdaf   : > { %1607 = vmatprep.subr.bf16.mxu1 %v1733_v0 }
 0xdb2   : > { %1608 = vmatpush3.bf16.msra.mxu1 %v1815_v6  ;;  %v1013_v6 = vld [vmem:[%s1012_s24] sm:$0x3]  ;;  %s1138_s24 = scalar_select %p404_p5, 0, 7 }
 0xdb3   : > { %v1020_v59 = vsub.f32 1.0, %v1013_v6 }
 0xdb4   : > { %s2006_s27 = sshll.u32 %s1138_s24, 1  ;;  %s2028_s24 = scalar_lea.vmem %s2080_s3, %s1522_s10 }
 0xdb5   : > { %s1140_s7 = scalar_lea.vmem %s1849_s13, %s2006_s27  ;;  %s1214_s23 = scalar_lea.vmem %s2078_s1, %s2006_s27 }
 0xdb6   : > { %s631_s22 = scalar_lea.vmem %s2028_s24, %s1870_s28  ;;  %s732_s10 = scalar_lea.vmem %s2028_s24, %s1903_s12 }
 0xdb7   : > { %s1035_s28 = scalar_lea.vmem %s2028_s24, %s1973_s9  ;;  %s1136_s12 = scalar_lea.vmem %s2028_s24, %s1991_s6 }
 0xe6d   : > { %v981_v49 = vpop.f32.mrf.mxu1 }
 0xe6e   : > { %v987_v50 = vadd.f32 %v981_v49, %v939_v48 }
 0xe6f   : > { %v1595_v51 = vpop.f32.mrf.mxu1 }
 0xe70   : > { %1685 = vtanh.f32 %v987_v50  ;;  %v1513_v53 = vmul.f32 -1.442695, %v987_v50  ;;  %v1141_v51 = vld [vmem:[%s1140_s7] sm:$0x3]  ;;  %s529_s7 = scalar_lea.vmem %s2028_s24, %s1851_s14  ;;  %s833_s14 = scalar_lea.vmem %s2028_s24, %s1927_s29 }
 0xe71   : > { %v984_v4 = vpop.f32.mrf.mxu1  ;;  %s1237_s29 = scalar_lea.vmem %s2028_s24, %s2006_s27 }
 0xe72   : > { %1687 = vpow2.f32 %v1513_v53 }
 0xe73   : > { %v1596_v52 = vpop.f32.mrf.mxu1 }
 0xe7d   : > { %v1686_v0 = vpop.eup %1685 }
 0xe7e   : > { %997 = vrot.lane.b32.xlu0 %v1686_v0, %s1736_s16 }
 0xe7f   : > { %v1688_v54 = vpop.eup %1687 }
 0xe80   : > { %v991_v55 = vadd.f32 1.0, %v1688_v54 }
 0xe82   : > { %1016 = vperm.xlu0 %1644, %v1013_v6   ;;  %1689 = vrcp.f32 %v991_v55  ;;  %v1215_v55 = vld [vmem:[%s1214_s23] sm:$0x3] }
 0xe8f   : > { %v1690_v56 = vpop.eup %1689 }
 0xe90   : > { %v995_v63 = vmul.f32 %v1690_v56, %v929_v62 }
 0xef0   : > { %v998_v57 = vpop.permute.xlu0 %997 }
 0xef1   : > { %v1000_v58 = vmul.f32 %v1690_v56, %v998_v57 }
 0xef3   : > { %1002 = vrot.lane.b32.xlu1 %v1000_v58, %s1737_s25 }
 0xef7   : > { %1023 = vperm.xlu1 %1643, %v1020_v59  }
 0xefd   : > { %v1017_v5 = vpop.permute.xlu0 %1016 }
 0xf65   : > { %v1003_v1 = vpop.permute.xlu1 %1002 }
 0xf66   : > { %v1005_v2 = vadd.f32 %v1003_v1, %v995_v63 }
 0xf68   : > { %1691 = vtanh.f32 %v1005_v2  ;;  %v1028_v33 = vmul.f32 %v1017_v5, %v1005_v2 }
 0xf72   : > { %v1024_v7 = vpop.permute.xlu1 %1023 }
 0xf73   : > { %v1026_v12 = vmul.f32 %v1024_v7, %v926_v45  ;;  %v1029_v32 = vmul.f32 %v1024_v7, %v929_v62  ;;  %v1222_v62 = vsub.f32 1.0, %v1215_v55 }
 0xf75   : > { %v1692_v3 = vpop.eup %1691  ;;  %v1030_v34 = vadd.f32 %v1029_v32, %v1028_v33 }
 0xf76   : > { %1008 = vrot.lane.b32.xlu0 %v1692_v3, %s1736_s16 }
 0xfe8   : > { %v1009_v9 = vpop.permute.xlu0 %1008 }
 0xfe9   : > { %v1011_v10 = vmul.f32 %v1690_v56, %v1009_v9 }
 0xfeb   : > { %v1984_v13 = vmul.f32 %v1017_v5, %v1011_v10 }
 0xfed   : > { %v1027_v14 = vadd.f32 %v1026_v12, %v1984_v13 }
 0xfef   : > { %v1041_v15 = vpack.c.bf16 %v1027_v14, %v1027_v14 }
 0xff1   : > { %1043 = vrot.lane.b32.xlu1 %v1041_v15, %s1737_s25 }
0x1063   : > { %v1044_v16 = vpop.permute.xlu1 %1043 }
0x1064   : > { %1602 = vmatmul.mubr.msk.bf16.vlgmr.msra.gmra.mxu0 %vm425_vm2, %v1044_v16 }
0x1124   : > { %v1082_v18 = vpop.f32.mrf.mxu0 }
0x1125   : > { %v1088_v19 = vadd.f32 %v1082_v18, %v1040_v17 }
0x1126   : > { %v1603_v20 = vpop.f32.mrf.mxu0 }
0x1127   : > { %1693 = vtanh.f32 %v1088_v19  ;;  %v1516_v25 = vmul.f32 -1.442695, %v1088_v19 }
0x1128   : > { %v1085_v21 = vpop.f32.mrf.mxu0 }
0x1129   : > { %1695 = vpow2.f32 %v1516_v25 }
0x112a   : > { %v1604_v22 = vpop.f32.mrf.mxu0 }
0x1134   : > { %v1694_v23 = vpop.eup %1693 }
0x1135   : > { %1098 = vrot.lane.b32.xlu0 %v1694_v23, %s1736_s16 }
0x1136   : > { %v1696_v26 = vpop.eup %1695 }
0x1137   : > { %v1092_v27 = vadd.f32 1.0, %v1696_v26 }
0x1139   : > { %1117 = vperm.xlu0 %1644, %v1114_v24   ;;  %1697 = vrcp.f32 %v1092_v27 }
0x1146   : > { %v1698_v28 = vpop.eup %1697 }
0x1147   : > { %v1096_v35 = vmul.f32 %v1698_v28, %v1030_v34 }
0x11a7   : > { %v1099_v29 = vpop.permute.xlu0 %1098 }
0x11a8   : > { %v1101_v30 = vmul.f32 %v1698_v28, %v1099_v29 }
0x11aa   : > { %1103 = vrot.lane.b32.xlu1 %v1101_v30, %s1737_s25 }
0x11ae   : > { %1124 = vperm.xlu1 %1643, %v1121_v31  }
0x11b4   : > { %v1118_v41 = vpop.permute.xlu0 %1117 }
0x121c   : > { %v1104_v37 = vpop.permute.xlu1 %1103 }
0x121d   : > { %v1106_v38 = vadd.f32 %v1104_v37, %v1096_v35 }
0x121f   : > { %1699 = vtanh.f32 %v1106_v38  ;;  %v1129_v1 = vmul.f32 %v1118_v41, %v1106_v38 }
0x1229   : > { %v1125_v42 = vpop.permute.xlu1 %1124 }
0x122a   : > { %v1127_v46 = vmul.f32 %v1125_v42, %v1027_v14  ;;  %v1130_v63 = vmul.f32 %v1125_v42, %v1030_v34 }
0x122c   : > { %v1700_v39 = vpop.eup %1699  ;;  %v1131_v2 = vadd.f32 %v1130_v63, %v1129_v1 }
0x122d   : > { %1109 = vrot.lane.b32.xlu0 %v1700_v39, %s1736_s16 }
0x129f   : > { %v1110_v43 = vpop.permute.xlu0 %1109 }
0x12a0   : > { %v1112_v45 = vmul.f32 %v1698_v28, %v1110_v43 }
0x12a2   : > { %v1120_v47 = vmul.f32 %v1118_v41, %v1112_v45 }
0x12a4   : > { %v1128_v48 = vadd.f32 %v1127_v46, %v1120_v47 }
0x12a6   : > { %v1142_v49 = vpack.c.bf16 %v1128_v48, %v1128_v48 }
0x12a8   : > { %1144 = vrot.lane.b32.xlu1 %v1142_v49, %s1737_s25 }
0x131a   : > { %v1145_v50 = vpop.permute.xlu1 %1144 }
0x131b   : > { %1610 = vmatmul.mubr.msk.bf16.vlgmr.msra.gmra.mxu1 %vm425_vm2, %v1145_v50 }
0x13db   : > { %v1183_v4 = vpop.f32.mrf.mxu1 }
0x13dc   : > { %v1189_v52 = vadd.f32 %v1183_v4, %v1141_v51 }
0x13dd   : > { %v1611_v0 = vpop.f32.mrf.mxu1 }
0x13de   : > { %1701 = vtanh.f32 %v1189_v52  ;;  %v1519_v56 = vmul.f32 -1.442695, %v1189_v52 }
0x13df   : > { %v1186_v6 = vpop.f32.mrf.mxu1 }
0x13e0   : > { %1703 = vpow2.f32 %v1519_v56 }
0x13e1   : > { %v1612_v53 = vpop.f32.mrf.mxu1 }
0x13eb   : > { %v1702_v54 = vpop.eup %1701 }
0x13ec   : > { %1199 = vrot.lane.b32.xlu0 %v1702_v54, %s1736_s16 }
0x13ed   : > { %v1704_v57 = vpop.eup %1703 }
0x13ee   : > { %v1193_v58 = vadd.f32 1.0, %v1704_v57 }
0x13f0   : > { %1218 = vperm.xlu0 %1644, %v1215_v55   ;;  %1705 = vrcp.f32 %v1193_v58 }
0x13fd   : > { %v1706_v59 = vpop.eup %1705 }
0x13fe   : > { %v1197_v3 = vmul.f32 %v1706_v59, %v1131_v2 }
0x145e   : > { %v1200_v60 = vpop.permute.xlu0 %1199 }
0x145f   : > { %v1202_v61 = vmul.f32 %v1706_v59, %v1200_v60 }
0x1461   : > { %1204 = vrot.lane.b32.xlu1 %v1202_v61, %s1737_s25 }
0x1465   : > { %1225 = vperm.xlu1 %1643, %v1222_v62  }
0x1469   : > { %526 = vrot.lane.b32.xlu1 %v1865_v36, %s1737_s25 }
0x146b   : > { %v1219_v36 = vpop.permute.xlu0 %1218 }
0x146d   : > { %729 = vrot.lane.b32.xlu1 %v1914_v40, %s1737_s25 }
0x1471   : > { %931 = vrot.lane.b32.xlu1 %v1961_v44, %s1737_s25 }
0x1475   : > { %1133 = vrot.lane.b32.xlu1 %v1120_v47, %s1737_s25 }
0x14d3   : > { %v1205_v5 = vpop.permute.xlu1 %1204 }
0x14d4   : > { %v1207_v7 = vadd.f32 %v1205_v5, %v1197_v3 }
0x14d6   : > { %1707 = vtanh.f32 %v1207_v7  ;;  %v1230_v44 = vmul.f32 %v1219_v36, %v1207_v7 }
0x14e0   : > { %v1226_v40 = vpop.permute.xlu1 %1225 }
0x14e1   : > { %v1231_v9 = vmul.f32 %v1226_v40, %v1131_v2  ;;  %v1228_v18 = vmul.f32 %v1226_v40, %v1128_v48 }
0x14e3   : > { %v1708_v10 = vpop.eup %1707  ;;  %v1232_v12 = vadd.f32 %v1231_v9, %v1230_v44 }
0x14e4   : > { %v527_v14 = vpop.permute.xlu1 %526  ;;  %1210 = vrot.lane.b32.xlu0 %v1708_v10, %s1736_s16  ;;  %s934_s16 = scalar_lea.vmem %s2028_s24, %s1950_s17 }
0x14e5   : > { %531 = vst.msk [vmem:[%s529_s7] sm:$0x3] %vm409_vm1, %v527_v14 }
0x14e8   : > { %628 = vrot.lane.b32.xlu0 %v1890_v8, %s1737_s25  ;;  %v730_v16 = vpop.permute.xlu1 %729 }
0x14ec   : > { %830 = vrot.lane.b32.xlu0 %v1938_v11, %s1737_s25 }
0x14f0   : > { %1032 = vrot.lane.b32.xlu0 %v1984_v13, %s1737_s25  ;;  %v932_v13 = vpop.permute.xlu1 %931 }
0x14f4   : > { %v1134_v22 = vpop.permute.xlu1 %1133 }
0x1556   : > { %v1211_v15 = vpop.permute.xlu0 %1210 }
0x1557   : > { %v1213_v17 = vmul.f32 %v1706_v59, %v1211_v15 }
0x1559   : > { %v1221_v19 = vmul.f32 %v1219_v36, %v1213_v17 }
0x155a   : > { %v629_v8 = vpop.permute.xlu0 %628 }
0x155b   : > { %632 = vst.msk [vmem:[%s631_s22] sm:$0x3] %vm409_vm1, %v629_v8  ;;  %1234 = vrot.lane.b32.xlu0 %v1221_v19, %s1737_s25  ;;  %v1229_v11 = vadd.f32 %v1228_v18, %v1221_v19 }
0x155c   : > { %733 = vst.msk [vmem:[%s732_s10] sm:$0x3] %vm409_vm1, %v730_v16 }
0x155d   : > { %1240 = vrot.lane.b32.xlu1 %v1229_v11, %s1737_s25 }
0x155e   : > { %v831_v20 = vpop.permute.xlu0 %830 }
0x155f   : > { %834 = vst.msk [vmem:[%s833_s14] sm:$0x3] %vm409_vm1, %v831_v20  ;;  %1245 = vrot.lane.b32.xlu0 %v1232_v12, %s1738_s26 }
0x1560   : > { %935 = vst.msk [vmem:[%s934_s16] sm:$0x3] %vm409_vm1, %v932_v13 }
0x1562   : > { %v1033_v21 = vpop.permute.xlu0 %1032 }
0x1563   : > { %1036 = vst.msk [vmem:[%s1035_s28] sm:$0x3] %vm409_vm1, %v1033_v21 }
0x1564   : > { %1137 = vst.msk [vmem:[%s1136_s12] sm:$0x3] %vm409_vm1, %v1134_v22 }
0x15cd   : > { %v1235_v23 = vpop.permute.xlu0 %1234 }
0x15ce   : > { %1238 = vst.msk [vmem:[%s1237_s29] sm:$0x3] %vm409_vm1, %v1235_v23 }
0x15cf   : > { %v1241_v24 = vpop.permute.xlu1 %1240 }
0x15d0   : > { %1243 = vst.msk [vmem:[%s1807_s30] sm:$0x3] %vm409_vm1, %v1241_v24 }
0x15d1   : > { %v1246_v25 = vpop.permute.xlu0 %1245 }
0x15d2   : > { %1248 = vst.msk [vmem:[%s1835_s8] sm:$0x3] %vm409_vm1, %v1246_v25 }
0x15d3 PF: > { %s16_s20 = sadd.s32 1, %s1731_s20   ;;  %s2083_s18 = smov %s1727_s19 }
0x15d4   : > { %p13_p6 = scmp.ge.s32.totalorder %s16_s20, 4   ;;  %s2084_s19 = smov %s2086_s21 }
0x15d6   :  { %15 = sbr.rel (!%p13_p6) target bundleno = 2 (0x2), region = 120 }

</bundles_post_ra>
